<compile_context>
chip_gen: v6e
topology: v6e:2x2x1
jax: 0.10.0
libtpu: 0.0.40
codegen_flags: <defaults>
</compile_context>

<pallas_src>
import functools

import jax
import jax.numpy as jnp
from jax.experimental import pallas as pl
from jax.experimental.pallas import tpu as pltpu


# ----------------------------------------------------------------------------
# Pallas kernel: Bt batch rows per grid step, everything resident in VMEM.
# ----------------------------------------------------------------------------
def rumamba_kernel(x_ref, w_in_ref, conv_w_ref, conv_b_ref, dt_bias_ref,
                   A_log_ref, D_ref, norm_w_ref, w_cls_ref, b_cls_ref,
                   pred_ref, hid_ref=None, *,
                   d_inner, d_state, d_conv, nheads, headdim, eps):
    Bt, T, d_model = x_ref.shape
    conv_dim = d_inner + 2 * d_state
    f32 = jnp.float32

    # ---- in_proj (bias=False): bf16 operands, f32 accumulation, lane-dense --
    x2 = x_ref[...].reshape(Bt * T, d_model)                 # already bf16
    zxbcdt = jnp.dot(x2, w_in_ref[...],
                     preferred_element_type=f32).reshape(Bt, T, -1)
    z = zxbcdt[:, :, :d_inner]                               # (Bt, T, d_inner)
    xBC = zxbcdt[:, :, d_inner:d_inner + conv_dim]           # (Bt, T, conv_dim)
    dt = zxbcdt[:, :, d_inner + conv_dim:d_inner + conv_dim + nheads]
    # TODO(synk): for long sequences compute the nheads dt columns with a
    # dedicated f32 matvec so bf16 error does not compound inside exp(cum).

    # ---- causal depthwise conv1d over time + SiLU ----------------------------
    # Tap k = d_conv-1 is unshifted; earlier taps are time-shifted copies built
    # from offset-0 slices (no extra padded buffer, no misaligned slice starts).
    cw = conv_w_ref[...]                                     # (d_conv, conv_dim)
    acc = xBC * cw[d_conv - 1:d_conv, :] + conv_b_ref[...]
    for k in range(d_conv - 1):
        sft = d_conv - 1 - k
        if sft >= T:
            continue                                         # tap sees only padding
        shifted = jnp.concatenate(
            [jnp.zeros((Bt, sft, conv_dim), f32), xBC[:, :T - sft, :]], axis=1)
        acc = acc + shifted * cw[k:k + 1, :]
    xbc = acc * jax.nn.sigmoid(acc)                          # SiLU

    x_ssm = xbc[:, :, :d_inner]                              # (Bt, T, d_inner)
    Bmat = xbc[:, :, d_inner:d_inner + d_state]              # (Bt, T, N)  ngroups=1
    Cmat = xbc[:, :, d_inner + d_state:]                     # (Bt, T, N)

    dt = jax.nn.softplus(dt + dt_bias_ref[...])              # (Bt, T, H)
    A = -jnp.exp(A_log_ref[...])                             # (1, H)
    dtA = dt * A[:, None, :]                                 # (Bt, T, H), always <= 0

    # ---- exact SSD decomposition (single chunk == whole sequence) -----------
    # h_t = exp(dt_t A) h_{t-1} + dt_t B_t x_t ;  y_t = C_t · h_t + D x_t
    # => y[t] = sum_{s<=t} exp(cum[t]-cum[s]) (C_t·B_s) dt_s x_s + D x_t
    # TODO(synk): for very long T, split into fixed-size chunks with a carried
    # per-head state (Q ~ 256 on v6e/v7x, 128 on v5e); at this module's
    # sequence lengths (T ~ 8-14) a single chunk is exact and cheapest.

    # cumulative sum over time: Hillis-Steele scan, log2(T) shift-adds on a
    # tiny (Bt, T, H) slab -- no MXU op, no (Bt, T, T) tril temporary.
    cum = dtA
    step = 1
    while step < T:
        cum = cum + jnp.concatenate(
            [jnp.zeros((Bt, step, nheads), f32), cum[:, :T - step, :]], axis=1)
        step *= 2

    # causal additive mask, hoisted once out of the head loop.
    row = jax.lax.broadcasted_iota(jnp.int32, (T, T), 0)
    col = jax.lax.broadcasted_iota(jnp.int32, (T, T), 1)
    neg_mask = jnp.where(row >= col, 0.0, -1e30).astype(f32)  # (T, T)

    CB = jnp.einsum('btn,bsn->bts', Cmat, Bmat,
                    preferred_element_type=f32)               # (Bt, T, T)

    Dvals = D_ref[...]                                        # (1, H)
    y_heads = []
    for h in range(nheads):                                   # H small, static
        cum_h = cum[:, :, h]                                  # (Bt, T)
        diff = cum_h[:, :, None] - cum_h[:, None, :]          # (Bt, T, T), <= 0 causal
        Mh = CB * jnp.exp(diff + neg_mask[None, :, :])        # masked decay ⊙ CB
        xh = x_ssm[:, :, h * headdim:(h + 1) * headdim]       # (Bt, T, P)
        dtx = dt[:, :, h:h + 1] * xh                          # (Bt, T, P)
        yh = jnp.einsum('bts,bsp->btp', Mh, dtx,
                        preferred_element_type=f32)           # (Bt, T, P)
        y_heads.append(yh + Dvals[:, h:h + 1][:, :, None] * xh)   # D skip (no dt)
    y = jnp.concatenate(y_heads, axis=-1)                     # (Bt, T, d_inner)

    # ---- gated RMSNorm (norm_before_gate=False): rmsnorm(y * silu(z)) * w ---
    y = y * (z * jax.nn.sigmoid(z))
    var = jnp.mean(y * y, axis=-1, keepdims=True)
    hidden = y * jax.lax.rsqrt(var + eps) * norm_w_ref[...]   # (Bt, T, d_inner)

    if hid_ref is not None:                                   # optional output
        hid_ref[...] = hidden.astype(hid_ref.dtype)

    # NOTE: mamba out_proj ("outputs") intentionally skipped (unused by module).

    # ---- per-timestep classifier (Dropout identity at eval); lane-padded ----
    h2 = hidden.reshape(Bt * T, d_inner).astype(jnp.bfloat16)
    pred = jnp.dot(h2, w_cls_ref[...],
                   preferred_element_type=f32) + b_cls_ref[...]
    pred_ref[...] = pred.reshape(Bt, T, -1).astype(pred_ref.dtype)


# ----------------------------------------------------------------------------
# One-time parameter preparation (bf16 casts + lane padding), hoisted out of
# the per-call hot path.
# ----------------------------------------------------------------------------
def prepare_params(params, *, num_class, d_state=128, d_conv=4, expand=2,
                   headdim=64):
    d_model, d_in_proj = params["w_in"].shape
    d_inner = expand * d_model
    nheads = d_inner // headdim
    assert d_in_proj == 2 * d_inner + 2 * d_state + nheads
    d_in_pad = ((d_in_proj + 127) // 128) * 128               # 772 -> 896
    nc_pad = max(128, ((num_class + 127) // 128) * 128)       # lane-dense output

    w_in = jnp.zeros((d_model, d_in_pad), jnp.bfloat16)
    w_in = w_in.at[:, :d_in_proj].set(params["w_in"].astype(jnp.bfloat16))
    w_cls = jnp.zeros((d_inner, nc_pad), jnp.bfloat16)
    w_cls = w_cls.at[:, :num_class].set(params["w_cls"].astype(jnp.bfloat16))
    b_cls = jnp.zeros((1, nc_pad), jnp.float32)
    b_cls = b_cls.at[:, :num_class].set(params["b_cls"])

    return {
        "w_in": w_in, "w_cls": w_cls, "b_cls": b_cls,
        "conv_w": params["conv_w"], "conv_b": params["conv_b"],
        "dt_bias": params["dt_bias"], "A_log": params["A_log"],
        "D": params["D"], "norm_w": params["norm_w"],
        "num_class": num_class, "d_state": d_state, "d_conv": d_conv,
        "expand": expand, "headdim": headdim,
    }


# ----------------------------------------------------------------------------
# Wrapper
# ----------------------------------------------------------------------------
def rumamba_forward(inputs, prepped, *, eps=1e-5, return_context=False):
    B, T, d_model = inputs.shape
    num_class = prepped["num_class"]
    d_state, d_conv = prepped["d_state"], prepped["d_conv"]
    expand, headdim = prepped["expand"], prepped["headdim"]
    d_inner = expand * d_model
    nheads = d_inner // headdim
    conv_dim = d_inner + 2 * d_state
    d_in_pad = prepped["w_in"].shape[1]
    nc_pad = prepped["w_cls"].shape[1]

    # --- batch tiling: fill the MXU M-dim but keep >=2 grid steps (v7x) -----
    Bt = max(1, min(B, 512 // max(T, 1)))
    if B >= 2:
        Bt = min(Bt, max(1, (B + 1) // 2))          # >=2 steps -> both v7x TCs
    # rough per-row VMEM working set (f32 temps dominate) and cap / limit.
    bytes_per_row = 4 * T * (d_in_pad + 4 * conv_dim + 8 * d_inner
                             + 4 * T + 2 * nc_pad + d_model)
    Bt = max(1, min(Bt, (24 << 20) // max(bytes_per_row, 1)))
    B_pad = ((B + Bt - 1) // Bt) * Bt
    grid = (B_pad // Bt,)
    const_bytes = (2 * d_model * d_in_pad + 2 * d_inner * nc_pad
                   + 4 * (d_conv + 2) * conv_dim + 4 * (d_inner + nc_pad + 32))
    vmem_limit = int(min(max(2 * Bt * bytes_per_row + const_bytes, 32 << 20),
                         64 << 20))

    # Stream activations in bf16 (the only pipelined input); accumulate in f32.
    x = inputs.astype(jnp.bfloat16)
    if B_pad != B:
        x = jnp.concatenate(
            [x, jnp.zeros((B_pad - B, T, d_model), jnp.bfloat16)], axis=0)

    kernel = functools.partial(
        rumamba_kernel, d_inner=d_inner, d_state=d_state, d_conv=d_conv,
        nheads=nheads, headdim=headdim, eps=eps)

    def fixed(shape):
        # constant (grid-invariant) block -> single-buffered, fetched once.
        n = len(shape)
        return pl.BlockSpec(shape, lambda b, n=n: (0,) * n,
                            pipeline_mode=pl.Buffered(1))

    in_specs = [
        pl.BlockSpec((Bt, T, d_model), lambda b: (b, 0, 0)),  # inputs (bf16)
        fixed((d_model, d_in_pad)),                           # in_proj W^T (bf16, padded)
        fixed((d_conv, conv_dim)),                            # conv1d weight
        fixed((1, conv_dim)),                                 # conv1d bias
        fixed((1, nheads)),                                   # dt_bias
        fixed((1, nheads)),                                   # A_log
        fixed((1, nheads)),                                   # D
        fixed((1, d_inner)),                                  # RMSNormGated weight
        fixed((d_inner, nc_pad)),                             # classifier W^T (bf16, padded)
        fixed((1, nc_pad)),                                   # classifier bias (padded)
    ]
    out_specs = [pl.BlockSpec((Bt, T, nc_pad), lambda b: (b, 0, 0))]
    out_shape = [jax.ShapeDtypeStruct((B_pad, T, nc_pad), jnp.bfloat16)]
    if return_context:
        out_specs.append(pl.BlockSpec((Bt, T, d_inner), lambda b: (b, 0, 0)))
        out_shape.append(jax.ShapeDtypeStruct((B_pad, T, d_inner), jnp.bfloat16))

    outs = pl.pallas_call(
        kernel,
        out_shape=out_shape,
        grid_spec=pltpu.PrefetchScalarGridSpec(
            num_scalar_prefetch=0,
            grid=grid,
            in_specs=in_specs,
            out_specs=out_specs),
        compiler_params=pltpu.CompilerParams(
            dimension_semantics=("parallel",),
            vmem_limit_bytes=vmem_limit),
    )(x, prepped["w_in"], prepped["conv_w"], prepped["conv_b"],
      prepped["dt_bias"], prepped["A_log"], prepped["D"], prepped["norm_w"],
      prepped["w_cls"], prepped["b_cls"])

    pred = outs[0][:B, :, :num_class].astype(jnp.float32)
    if return_context:
        return pred, outs[1][:B].astype(jnp.float32)
    return pred


# ----------------------------------------------------------------------------
# Pure-JAX reference (exact per-step recurrence, all f32) for verification.
# ----------------------------------------------------------------------------
def reference_forward(inputs, p, *, d_state=128, d_conv=4, expand=2,
                      headdim=64, eps=1e-5):
    B, T, d_model = inputs.shape
    d_inner = expand * d_model
    nheads = d_inner // headdim
    conv_dim = d_inner + 2 * d_state

    zxbcdt = inputs @ p["w_in"]
    z = zxbcdt[..., :d_inner]
    xBC = zxbcdt[..., d_inner:d_inner + conv_dim]
    dt = zxbcdt[..., d_inner + conv_dim:]

    pad = jnp.concatenate(
        [jnp.zeros((B, d_conv - 1, conv_dim), jnp.float32), xBC], axis=1)
    conv = sum(pad[:, k:k + T, :] * p["conv_w"][k][None, None, :]
               for k in range(d_conv)) + p["conv_b"][0]
    xBC = jax.nn.silu(conv)

    x = xBC[..., :d_inner].reshape(B, T, nheads, headdim)
    Bm = xBC[..., d_inner:d_inner + d_state]
    Cm = xBC[..., d_inner + d_state:]

    dt = jax.nn.softplus(dt + p["dt_bias"][0])
    A = -jnp.exp(p["A_log"][0])
    Dp = p["D"][0]

    h = jnp.zeros((B, nheads, headdim, d_state), jnp.float32)
    ys = []
    for t in range(T):
        dA = jnp.exp(dt[:, t] * A)                                    # (B,H)
        dBx = (dt[:, t, :, None] * x[:, t])[..., None] * Bm[:, t, None, None, :]
        h = dA[:, :, None, None] * h + dBx
        y_t = jnp.einsum("bhpn,bn->bhp", h, Cm[:, t]) + Dp[None, :, None] * x[:, t]
        ys.append(y_t)
    y = jnp.stack(ys, axis=1).reshape(B, T, d_inner)

    y = y * jax.nn.silu(z)
    hidden = y * jax.lax.rsqrt(jnp.mean(y * y, -1, keepdims=True) + eps) * p["norm_w"][0]
    pred = hidden @ p["w_cls"] + p["b_cls"][0]
    return pred, hidden


# ----------------------------------------------------------------------------
def init_params(key, *, d_model, num_class, d_state=128, d_conv=4,
                expand=2, headdim=64):
    d_inner = expand * d_model
    nheads = d_inner // headdim
    conv_dim = d_inner + 2 * d_state
    d_in_proj = 2 * d_inner + 2 * d_state + nheads
    ks = jax.random.split(key, 8)
    f32 = jnp.float32
    return {
        # in_proj.weight stored transposed (d_model, d_in_proj) for x @ W
        "w_in": 0.02 * jax.random.normal(ks[0], (d_model, d_in_proj), f32),
        # depthwise conv weight, stored (d_conv, conv_dim)
        "conv_w": 0.1 * jax.random.normal(ks[1], (d_conv, conv_dim), f32),
        "conv_b": 0.01 * jax.random.normal(ks[2], (1, conv_dim), f32),
        "dt_bias": 0.1 * jax.random.normal(ks[3], (1, nheads), f32),
        # A_log such that A = -exp(A_log) is in roughly [-4, -1]
        "A_log": jnp.log(jax.random.uniform(ks[4], (1, nheads), f32, 1.0, 4.0)),
        "D": jnp.ones((1, nheads), f32),
        "norm_w": jnp.ones((1, d_inner), f32),
        # classifier Linear(d_inner, num_class): weight stored transposed
        "w_cls": 0.02 * jax.random.normal(ks[5], (d_inner, num_class), f32),
        "b_cls": 0.01 * jax.random.normal(ks[6], (1, num_class), f32),
    }


if __name__ == "__main__":
    # Small shapes consistent with the module: feat_in=128 -> d_inner=256,
    # headdim=64 -> nheads=4, d_state=128, d_conv=4, chunk_size=1.
    B, T, feat_in, num_class = 2, 8, 128, 10

    key = jax.random.PRNGKey(0)
    k_in, k_par = jax.random.split(key)
    inputs = jax.random.normal(k_in, (B, T, feat_in), jnp.float32)
    params = init_params(k_par, d_model=feat_in, num_class=num_class)
    prepped = prepare_params(params, num_class=num_class)   # one-time weight prep

    # Default path (predictions only -> no hidden_states DMA).
    y = rumamba_forward(inputs, prepped)
    y = jax.block_until_ready(y)
    assert y.shape == (B, T, num_class), y.shape

    # return_context path (exercises the optional hidden output).
    y2, hid = rumamba_forward(inputs, prepped, return_context=True)
    jax.block_until_ready((y2, hid))
    assert hid.shape == (B, T, 2 * feat_in), hid.shape

    # Cross-check against a plain-JAX f32 reference.  The kernel streams the
    # activations in bf16, so the reference consumes the same bf16-quantized
    # activations (f32 math, f32 weights); the bf16 MXU weight path and the
    # bf16 output writeback stay inside the tolerance.
    x_q = inputs.astype(jnp.bfloat16).astype(jnp.float32)
    ref_pred, ref_hid = reference_forward(x_q, params)
    ref_pred = jax.block_until_ready(ref_pred)
    assert jnp.allclose(y, ref_pred, rtol=2e-2, atol=2e-2), (
        float(jnp.max(jnp.abs(y - ref_pred))))
    assert jnp.allclose(y2, ref_pred, rtol=2e-2, atol=2e-2), (
        float(jnp.max(jnp.abs(y2 - ref_pred))))
    assert jnp.allclose(hid, ref_hid, rtol=2e-2, atol=2e-2), (
        float(jnp.max(jnp.abs(hid - ref_hid))))

    print("KERNEL_OK")
</pallas_src>

<mosaic_0001>
module attributes {stable_mosaic.version = 11 : i64} {
  func.func @rumamba_kernel(%arg0: i32, %arg1: memref<1x8x128xbf16, #tpu.memory_space<vmem>>, %arg2: memref<128x896xbf16, #tpu.memory_space<vmem>>, %arg3: memref<4x512xf32, #tpu.memory_space<vmem>>, %arg4: memref<1x512xf32, #tpu.memory_space<vmem>>, %arg5: memref<1x4xf32, #tpu.memory_space<vmem>>, %arg6: memref<1x4xf32, #tpu.memory_space<vmem>>, %arg7: memref<1x4xf32, #tpu.memory_space<vmem>>, %arg8: memref<1x256xf32, #tpu.memory_space<vmem>>, %arg9: memref<256x128xbf16, #tpu.memory_space<vmem>>, %arg10: memref<1x128xf32, #tpu.memory_space<vmem>>, %arg11: memref<1x8x128xbf16, #tpu.memory_space<vmem>>) attributes {dimension_semantics = [#tpu.dimension_semantics<parallel>], iteration_bounds = array<i64: 2>, scalar_prefetch = 0 : i64, scratch_operands = 0 : i64, tpu.core_type = #tpu.core_type<tc>, window_params = [{transform_indices = @transform_0, window_bounds = array<i64: 1, 8, 128>}, {pipeline_mode = #tpu.pipeline_mode<synchronous>, transform_indices = @transform_1, window_bounds = array<i64: 128, 896>}, {pipeline_mode = #tpu.pipeline_mode<synchronous>, transform_indices = @transform_2, window_bounds = array<i64: 4, 512>}, {pipeline_mode = #tpu.pipeline_mode<synchronous>, transform_indices = @transform_3, window_bounds = array<i64: 1, 512>}, {pipeline_mode = #tpu.pipeline_mode<synchronous>, transform_indices = @transform_4, window_bounds = array<i64: 1, 4>}, {pipeline_mode = #tpu.pipeline_mode<synchronous>, transform_indices = @transform_5, window_bounds = array<i64: 1, 4>}, {pipeline_mode = #tpu.pipeline_mode<synchronous>, transform_indices = @transform_6, window_bounds = array<i64: 1, 4>}, {pipeline_mode = #tpu.pipeline_mode<synchronous>, transform_indices = @transform_7, window_bounds = array<i64: 1, 256>}, {pipeline_mode = #tpu.pipeline_mode<synchronous>, transform_indices = @transform_8, window_bounds = array<i64: 256, 128>}, {pipeline_mode = #tpu.pipeline_mode<synchronous>, transform_indices = @transform_9, window_bounds = array<i64: 1, 128>}, {transform_indices = @transform_10, window_bounds = array<i64: 1, 8, 128>}]} {
    %c0 = arith.constant 0 : index
    %c0_0 = arith.constant 0 : index
    %c0_1 = arith.constant 0 : index
    %0 = vector.load %arg1[%c0, %c0_0, %c0_1] : memref<1x8x128xbf16, #tpu.memory_space<vmem>>, vector<1x8x128xbf16>
    %1 = vector.shape_cast %0 : vector<1x8x128xbf16> to vector<8x128xbf16>
    %c0_2 = arith.constant 0 : index
    %c0_3 = arith.constant 0 : index
    %2 = vector.load %arg2[%c0_2, %c0_3] : memref<128x896xbf16, #tpu.memory_space<vmem>>, vector<128x896xbf16>
    %cst = arith.constant dense<0.000000e+00> : vector<8x896xf32>
    %3 = tpu.matmul %1, %2, %cst {dimension_numbers = #tpu.dot_dimension_numbers<[1], [0], [0], [1], [0, 0, 1, 1], [], []>} : vector<8x128xbf16>, vector<128x896xbf16>, vector<8x896xf32> -> vector<8x896xf32>
    %4 = vector.shape_cast %3 : vector<8x896xf32> to vector<1x8x896xf32>
    %5 = vector.extract_strided_slice %4 {offsets = [0, 0, 0], sizes = [1, 8, 256], strides = [1, 1, 1]} : vector<1x8x896xf32> to vector<1x8x256xf32>
    %6 = vector.extract_strided_slice %4 {offsets = [0, 0, 256], sizes = [1, 8, 512], strides = [1, 1, 1]} : vector<1x8x896xf32> to vector<1x8x512xf32>
    %7 = vector.extract_strided_slice %4 {offsets = [0, 0, 768], sizes = [1, 8, 4], strides = [1, 1, 1]} : vector<1x8x896xf32> to vector<1x8x4xf32>
    %c0_4 = arith.constant 0 : index
    %c0_5 = arith.constant 0 : index
    %8 = vector.load %arg3[%c0_4, %c0_5] : memref<4x512xf32, #tpu.memory_space<vmem>>, vector<4x512xf32>
    %9 = vector.extract_strided_slice %8 {offsets = [3, 0], sizes = [1, 512], strides = [1, 1]} : vector<4x512xf32> to vector<1x512xf32>
    %10 = vector.shape_cast %9 : vector<1x512xf32> to vector<1x1x512xf32>
    %11 = vector.broadcast %10 : vector<1x1x512xf32> to vector<1x8x512xf32>
    %12 = arith.mulf %6, %11 : vector<1x8x512xf32>
    %c0_6 = arith.constant 0 : index
    %c0_7 = arith.constant 0 : index
    %13 = vector.load %arg4[%c0_6, %c0_7] : memref<1x512xf32, #tpu.memory_space<vmem>>, vector<1x512xf32>
    %14 = vector.shape_cast %13 : vector<1x512xf32> to vector<1x1x512xf32>
    %15 = vector.broadcast %14 : vector<1x1x512xf32> to vector<1x8x512xf32>
    %16 = arith.addf %12, %15 : vector<1x8x512xf32>
    %cst_8 = arith.constant 0.000000e+00 : f32
    %17 = vector.broadcast %cst_8 : f32 to vector<1x3x512xf32>
    %18 = vector.extract_strided_slice %6 {offsets = [0, 0, 0], sizes = [1, 5, 512], strides = [1, 1, 1]} : vector<1x8x512xf32> to vector<1x5x512xf32>
    %19 = tpu.concatenate %17, %18 in 1 : vector<1x3x512xf32>, vector<1x5x512xf32> -> vector<1x8x512xf32>
    %20 = vector.extract_strided_slice %8 {offsets = [0, 0], sizes = [1, 512], strides = [1, 1]} : vector<4x512xf32> to vector<1x512xf32>
    %21 = vector.shape_cast %20 : vector<1x512xf32> to vector<1x1x512xf32>
    %22 = vector.broadcast %21 : vector<1x1x512xf32> to vector<1x8x512xf32>
    %23 = arith.mulf %19, %22 : vector<1x8x512xf32>
    %24 = arith.addf %16, %23 : vector<1x8x512xf32>
    %cst_9 = arith.constant 0.000000e+00 : f32
    %25 = vector.broadcast %cst_9 : f32 to vector<1x2x512xf32>
    %26 = vector.extract_strided_slice %6 {offsets = [0, 0, 0], sizes = [1, 6, 512], strides = [1, 1, 1]} : vector<1x8x512xf32> to vector<1x6x512xf32>
    %27 = tpu.concatenate %25, %26 in 1 : vector<1x2x512xf32>, vector<1x6x512xf32> -> vector<1x8x512xf32>
    %28 = vector.extract_strided_slice %8 {offsets = [1, 0], sizes = [1, 512], strides = [1, 1]} : vector<4x512xf32> to vector<1x512xf32>
    %29 = vector.shape_cast %28 : vector<1x512xf32> to vector<1x1x512xf32>
    %30 = vector.broadcast %29 : vector<1x1x512xf32> to vector<1x8x512xf32>
    %31 = arith.mulf %27, %30 : vector<1x8x512xf32>
    %32 = arith.addf %24, %31 : vector<1x8x512xf32>
    %cst_10 = arith.constant 0.000000e+00 : f32
    %33 = vector.broadcast %cst_10 : f32 to vector<1x1x512xf32>
    %34 = vector.extract_strided_slice %6 {offsets = [0, 0, 0], sizes = [1, 7, 512], strides = [1, 1, 1]} : vector<1x8x512xf32> to vector<1x7x512xf32>
    %35 = tpu.concatenate %33, %34 in 1 : vector<1x1x512xf32>, vector<1x7x512xf32> -> vector<1x8x512xf32>
    %36 = vector.extract_strided_slice %8 {offsets = [2, 0], sizes = [1, 512], strides = [1, 1]} : vector<4x512xf32> to vector<1x512xf32>
    %37 = vector.shape_cast %36 : vector<1x512xf32> to vector<1x1x512xf32>
    %38 = vector.broadcast %37 : vector<1x1x512xf32> to vector<1x8x512xf32>
    %39 = arith.mulf %35, %38 : vector<1x8x512xf32>
    %40 = arith.addf %32, %39 : vector<1x8x512xf32>
    %41 = arith.negf %40 : vector<1x8x512xf32>
    %42 = math.exp %41 : vector<1x8x512xf32>
    %cst_11 = arith.constant 1.000000e+00 : f32
    %43 = vector.broadcast %cst_11 : f32 to vector<1x8x512xf32>
    %44 = arith.addf %43, %42 : vector<1x8x512xf32>
    %45 = arith.divf %43, %44 : vector<1x8x512xf32>
    %46 = arith.mulf %40, %45 : vector<1x8x512xf32>
    %47 = vector.extract_strided_slice %46 {offsets = [0, 0, 0], sizes = [1, 8, 256], strides = [1, 1, 1]} : vector<1x8x512xf32> to vector<1x8x256xf32>
    %48 = vector.extract_strided_slice %46 {offsets = [0, 0, 256], sizes = [1, 8, 128], strides = [1, 1, 1]} : vector<1x8x512xf32> to vector<1x8x128xf32>
    %49 = vector.extract_strided_slice %46 {offsets = [0, 0, 384], sizes = [1, 8, 128], strides = [1, 1, 1]} : vector<1x8x512xf32> to vector<1x8x128xf32>
    %c0_12 = arith.constant 0 : index
    %c0_13 = arith.constant 0 : index
    %50 = vector.load %arg5[%c0_12, %c0_13] : memref<1x4xf32, #tpu.memory_space<vmem>>, vector<1x4xf32>
    %51 = vector.shape_cast %50 : vector<1x4xf32> to vector<1x1x4xf32>
    %52 = vector.broadcast %51 : vector<1x1x4xf32> to vector<1x8x4xf32>
    %53 = arith.addf %7, %52 : vector<1x8x4xf32>
    %cst_14 = arith.constant 0.000000e+00 : f32
    %54 = vector.broadcast %cst_14 : f32 to vector<1x8x4xf32>
    %55 = arith.maximumf %53, %54 : vector<1x8x4xf32>
    %56 = vector.broadcast %cst_14 : f32 to vector<1x8x4xf32>
    %57 = arith.subf %53, %56 : vector<1x8x4xf32>
    %58 = arith.cmpf one, %57, %57 : vector<1x8x4xf32>
    %59 = vector.broadcast %cst_14 : f32 to vector<1x8x4xf32>
    %60 = arith.addf %53, %59 : vector<1x8x4xf32>
    %61 = math.absf %57 : vector<1x8x4xf32>
    %cst_15 = arith.constant 0.000000e+00 : f32
    %62 = vector.broadcast %cst_15 : f32 to vector<1x8x4xf32>
    %63 = arith.subf %62, %61 : vector<1x8x4xf32>
    %64 = math.exp %63 : vector<1x8x4xf32>
    %65 = math.log1p %64 : vector<1x8x4xf32>
    %66 = arith.addf %55, %65 : vector<1x8x4xf32>
    %67 = arith.select %58, %60, %66 : vector<1x8x4xi1>, vector<1x8x4xf32>
    %c0_16 = arith.constant 0 : index
    %c0_17 = arith.constant 0 : index
    %68 = vector.load %arg6[%c0_16, %c0_17] : memref<1x4xf32, #tpu.memory_space<vmem>>, vector<1x4xf32>
    %69 = math.exp %68 : vector<1x4xf32>
    %cst_18 = arith.constant 0.000000e+00 : f32
    %70 = vector.broadcast %cst_18 : f32 to vector<1x4xf32>
    %71 = arith.subf %70, %69 : vector<1x4xf32>
    %72 = vector.shape_cast %71 : vector<1x4xf32> to vector<1x1x4xf32>
    %73 = vector.broadcast %72 : vector<1x1x4xf32> to vector<1x8x4xf32>
    %74 = arith.mulf %67, %73 : vector<1x8x4xf32>
    %cst_19 = arith.constant 0.000000e+00 : f32
    %75 = vector.broadcast %cst_19 : f32 to vector<1x1x4xf32>
    %76 = vector.extract_strided_slice %74 {offsets = [0, 0, 0], sizes = [1, 7, 4], strides = [1, 1, 1]} : vector<1x8x4xf32> to vector<1x7x4xf32>
    %77 = tpu.concatenate %75, %76 in 1 : vector<1x1x4xf32>, vector<1x7x4xf32> -> vector<1x8x4xf32>
    %78 = arith.addf %74, %77 : vector<1x8x4xf32>
    %cst_20 = arith.constant 0.000000e+00 : f32
    %79 = vector.broadcast %cst_20 : f32 to vector<1x2x4xf32>
    %80 = vector.extract_strided_slice %78 {offsets = [0, 0, 0], sizes = [1, 6, 4], strides = [1, 1, 1]} : vector<1x8x4xf32> to vector<1x6x4xf32>
    %81 = tpu.concatenate %79, %80 in 1 : vector<1x2x4xf32>, vector<1x6x4xf32> -> vector<1x8x4xf32>
    %82 = arith.addf %78, %81 : vector<1x8x4xf32>
    %cst_21 = arith.constant 0.000000e+00 : f32
    %83 = vector.broadcast %cst_21 : f32 to vector<1x4x4xf32>
    %84 = vector.extract_strided_slice %82 {offsets = [0, 0, 0], sizes = [1, 4, 4], strides = [1, 1, 1]} : vector<1x8x4xf32> to vector<1x4x4xf32>
    %85 = tpu.concatenate %83, %84 in 1 : vector<1x4x4xf32>, vector<1x4x4xf32> -> vector<1x8x4xf32>
    %86 = arith.addf %82, %85 : vector<1x8x4xf32>
    %87 = tpu.iota {dimensions = array<i32: 0>} : vector<8x8xi32>
    %88 = tpu.iota {dimensions = array<i32: 1>} : vector<8x8xi32>
    %89 = arith.cmpi sge, %87, %88 : vector<8x8xi32>
    %cst_22 = arith.constant 0.000000e+00 : f32
    %cst_23 = arith.constant -1.000000e+30 : f32
    %90 = vector.broadcast %cst_22 : f32 to vector<8x8xf32>
    %91 = vector.broadcast %cst_23 : f32 to vector<8x8xf32>
    %92 = arith.select %89, %90, %91 : vector<8x8xi1>, vector<8x8xf32>
    "tpu.trace_start"() <{level = 10 : i32, message = "btn,bsn->bts"}> : () -> ()
    %cst_24 = arith.constant dense<0.000000e+00> : vector<1x8x8xf32>
    %93 = tpu.matmul %49, %48, %cst_24 {dimension_numbers = #tpu.dot_dimension_numbers<[2], [2], [1], [1], [0, 0, 0, 1, 1, 1], [0], [0]>} : vector<1x8x128xf32>, vector<1x8x128xf32>, vector<1x8x8xf32> -> vector<1x8x8xf32>
    "tpu.trace_stop"() : () -> ()
    %c0_25 = arith.constant 0 : index
    %c0_26 = arith.constant 0 : index
    %94 = vector.load %arg7[%c0_25, %c0_26] : memref<1x4xf32, #tpu.memory_space<vmem>>, vector<1x4xf32>
    %95 = vector.extract_strided_slice %86 {offsets = [0, 0, 0], sizes = [1, 8, 1], strides = [1, 1, 1]} : vector<1x8x4xf32> to vector<1x8x1xf32>
    %96 = vector.shape_cast %95 : vector<1x8x1xf32> to vector<1x8xf32>
    %97 = vector.shape_cast %96 : vector<1x8xf32> to vector<1x8x1xf32>
    %98 = vector.shape_cast %96 : vector<1x8xf32> to vector<1x1x8xf32>
    %99 = vector.broadcast %97 : vector<1x8x1xf32> to vector<1x8x8xf32>
    %100 = vector.broadcast %98 : vector<1x1x8xf32> to vector<1x8x8xf32>
    %101 = arith.subf %99, %100 : vector<1x8x8xf32>
    %102 = vector.shape_cast %92 : vector<8x8xf32> to vector<1x8x8xf32>
    %103 = arith.addf %101, %102 : vector<1x8x8xf32>
    %104 = math.exp %103 : vector<1x8x8xf32>
    %105 = arith.mulf %93, %104 : vector<1x8x8xf32>
    %106 = vector.extract_strided_slice %47 {offsets = [0, 0, 0], sizes = [1, 8, 64], strides = [1, 1, 1]} : vector<1x8x256xf32> to vector<1x8x64xf32>
    %107 = vector.extract_strided_slice %67 {offsets = [0, 0, 0], sizes = [1, 8, 1], strides = [1, 1, 1]} : vector<1x8x4xf32> to vector<1x8x1xf32>
    %108 = vector.broadcast %107 : vector<1x8x1xf32> to vector<1x8x64xf32>
    %109 = arith.mulf %108, %106 : vector<1x8x64xf32>
    "tpu.trace_start"() <{level = 10 : i32, message = "bts,bsp->btp"}> : () -> ()
    %cst_27 = arith.constant dense<0.000000e+00> : vector<1x8x64xf32>
    %110 = tpu.matmul %105, %109, %cst_27 {dimension_numbers = #tpu.dot_dimension_numbers<[2], [1], [1], [2], [0, 0, 0, 1, 1, 2], [0], [0]>} : vector<1x8x8xf32>, vector<1x8x64xf32>, vector<1x8x64xf32> -> vector<1x8x64xf32>
    "tpu.trace_stop"() : () -> ()
    %111 = vector.extract_strided_slice %94 {offsets = [0, 0], sizes = [1, 1], strides = [1, 1]} : vector<1x4xf32> to vector<1x1xf32>
    %112 = vector.shape_cast %111 : vector<1x1xf32> to vector<1x1x1xf32>
    %113 = vector.broadcast %112 : vector<1x1x1xf32> to vector<1x8x64xf32>
    %114 = arith.mulf %113, %106 : vector<1x8x64xf32>
    %115 = arith.addf %110, %114 : vector<1x8x64xf32>
    %116 = vector.extract_strided_slice %86 {offsets = [0, 0, 1], sizes = [1, 8, 1], strides = [1, 1, 1]} : vector<1x8x4xf32> to vector<1x8x1xf32>
    %117 = vector.shape_cast %116 : vector<1x8x1xf32> to vector<1x8xf32>
    %118 = vector.shape_cast %117 : vector<1x8xf32> to vector<1x8x1xf32>
    %119 = vector.shape_cast %117 : vector<1x8xf32> to vector<1x1x8xf32>
    %120 = vector.broadcast %118 : vector<1x8x1xf32> to vector<1x8x8xf32>
    %121 = vector.broadcast %119 : vector<1x1x8xf32> to vector<1x8x8xf32>
    %122 = arith.subf %120, %121 : vector<1x8x8xf32>
    %123 = vector.shape_cast %92 : vector<8x8xf32> to vector<1x8x8xf32>
    %124 = arith.addf %122, %123 : vector<1x8x8xf32>
    %125 = math.exp %124 : vector<1x8x8xf32>
    %126 = arith.mulf %93, %125 : vector<1x8x8xf32>
    %127 = vector.extract_strided_slice %47 {offsets = [0, 0, 64], sizes = [1, 8, 64], strides = [1, 1, 1]} : vector<1x8x256xf32> to vector<1x8x64xf32>
    %128 = vector.extract_strided_slice %67 {offsets = [0, 0, 1], sizes = [1, 8, 1], strides = [1, 1, 1]} : vector<1x8x4xf32> to vector<1x8x1xf32>
    %129 = vector.broadcast %128 : vector<1x8x1xf32> to vector<1x8x64xf32>
    %130 = arith.mulf %129, %127 : vector<1x8x64xf32>
    "tpu.trace_start"() <{level = 10 : i32, message = "bts,bsp->btp"}> : () -> ()
    %cst_28 = arith.constant dense<0.000000e+00> : vector<1x8x64xf32>
    %131 = tpu.matmul %126, %130, %cst_28 {dimension_numbers = #tpu.dot_dimension_numbers<[2], [1], [1], [2], [0, 0, 0, 1, 1, 2], [0], [0]>} : vector<1x8x8xf32>, vector<1x8x64xf32>, vector<1x8x64xf32> -> vector<1x8x64xf32>
    "tpu.trace_stop"() : () -> ()
    %132 = vector.extract_strided_slice %94 {offsets = [0, 1], sizes = [1, 1], strides = [1, 1]} : vector<1x4xf32> to vector<1x1xf32>
    %133 = vector.shape_cast %132 : vector<1x1xf32> to vector<1x1x1xf32>
    %134 = vector.broadcast %133 : vector<1x1x1xf32> to vector<1x8x64xf32>
    %135 = arith.mulf %134, %127 : vector<1x8x64xf32>
    %136 = arith.addf %131, %135 : vector<1x8x64xf32>
    %137 = vector.extract_strided_slice %86 {offsets = [0, 0, 2], sizes = [1, 8, 1], strides = [1, 1, 1]} : vector<1x8x4xf32> to vector<1x8x1xf32>
    %138 = vector.shape_cast %137 : vector<1x8x1xf32> to vector<1x8xf32>
    %139 = vector.shape_cast %138 : vector<1x8xf32> to vector<1x8x1xf32>
    %140 = vector.shape_cast %138 : vector<1x8xf32> to vector<1x1x8xf32>
    %141 = vector.broadcast %139 : vector<1x8x1xf32> to vector<1x8x8xf32>
    %142 = vector.broadcast %140 : vector<1x1x8xf32> to vector<1x8x8xf32>
    %143 = arith.subf %141, %142 : vector<1x8x8xf32>
    %144 = vector.shape_cast %92 : vector<8x8xf32> to vector<1x8x8xf32>
    %145 = arith.addf %143, %144 : vector<1x8x8xf32>
    %146 = math.exp %145 : vector<1x8x8xf32>
    %147 = arith.mulf %93, %146 : vector<1x8x8xf32>
    %148 = vector.extract_strided_slice %47 {offsets = [0, 0, 128], sizes = [1, 8, 64], strides = [1, 1, 1]} : vector<1x8x256xf32> to vector<1x8x64xf32>
    %149 = vector.extract_strided_slice %67 {offsets = [0, 0, 2], sizes = [1, 8, 1], strides = [1, 1, 1]} : vector<1x8x4xf32> to vector<1x8x1xf32>
    %150 = vector.broadcast %149 : vector<1x8x1xf32> to vector<1x8x64xf32>
    %151 = arith.mulf %150, %148 : vector<1x8x64xf32>
    "tpu.trace_start"() <{level = 10 : i32, message = "bts,bsp->btp"}> : () -> ()
    %cst_29 = arith.constant dense<0.000000e+00> : vector<1x8x64xf32>
    %152 = tpu.matmul %147, %151, %cst_29 {dimension_numbers = #tpu.dot_dimension_numbers<[2], [1], [1], [2], [0, 0, 0, 1, 1, 2], [0], [0]>} : vector<1x8x8xf32>, vector<1x8x64xf32>, vector<1x8x64xf32> -> vector<1x8x64xf32>
    "tpu.trace_stop"() : () -> ()
    %153 = vector.extract_strided_slice %94 {offsets = [0, 2], sizes = [1, 1], strides = [1, 1]} : vector<1x4xf32> to vector<1x1xf32>
    %154 = vector.shape_cast %153 : vector<1x1xf32> to vector<1x1x1xf32>
    %155 = vector.broadcast %154 : vector<1x1x1xf32> to vector<1x8x64xf32>
    %156 = arith.mulf %155, %148 : vector<1x8x64xf32>
    %157 = arith.addf %152, %156 : vector<1x8x64xf32>
    %158 = vector.extract_strided_slice %86 {offsets = [0, 0, 3], sizes = [1, 8, 1], strides = [1, 1, 1]} : vector<1x8x4xf32> to vector<1x8x1xf32>
    %159 = vector.shape_cast %158 : vector<1x8x1xf32> to vector<1x8xf32>
    %160 = vector.shape_cast %159 : vector<1x8xf32> to vector<1x8x1xf32>
    %161 = vector.shape_cast %159 : vector<1x8xf32> to vector<1x1x8xf32>
    %162 = vector.broadcast %160 : vector<1x8x1xf32> to vector<1x8x8xf32>
    %163 = vector.broadcast %161 : vector<1x1x8xf32> to vector<1x8x8xf32>
    %164 = arith.subf %162, %163 : vector<1x8x8xf32>
    %165 = vector.shape_cast %92 : vector<8x8xf32> to vector<1x8x8xf32>
    %166 = arith.addf %164, %165 : vector<1x8x8xf32>
    %167 = math.exp %166 : vector<1x8x8xf32>
    %168 = arith.mulf %93, %167 : vector<1x8x8xf32>
    %169 = vector.extract_strided_slice %47 {offsets = [0, 0, 192], sizes = [1, 8, 64], strides = [1, 1, 1]} : vector<1x8x256xf32> to vector<1x8x64xf32>
    %170 = vector.extract_strided_slice %67 {offsets = [0, 0, 3], sizes = [1, 8, 1], strides = [1, 1, 1]} : vector<1x8x4xf32> to vector<1x8x1xf32>
    %171 = vector.broadcast %170 : vector<1x8x1xf32> to vector<1x8x64xf32>
    %172 = arith.mulf %171, %169 : vector<1x8x64xf32>
    "tpu.trace_start"() <{level = 10 : i32, message = "bts,bsp->btp"}> : () -> ()
    %cst_30 = arith.constant dense<0.000000e+00> : vector<1x8x64xf32>
    %173 = tpu.matmul %168, %172, %cst_30 {dimension_numbers = #tpu.dot_dimension_numbers<[2], [1], [1], [2], [0, 0, 0, 1, 1, 2], [0], [0]>} : vector<1x8x8xf32>, vector<1x8x64xf32>, vector<1x8x64xf32> -> vector<1x8x64xf32>
    "tpu.trace_stop"() : () -> ()
    %174 = vector.extract_strided_slice %94 {offsets = [0, 3], sizes = [1, 1], strides = [1, 1]} : vector<1x4xf32> to vector<1x1xf32>
    %175 = vector.shape_cast %174 : vector<1x1xf32> to vector<1x1x1xf32>
    %176 = vector.broadcast %175 : vector<1x1x1xf32> to vector<1x8x64xf32>
    %177 = arith.mulf %176, %169 : vector<1x8x64xf32>
    %178 = arith.addf %173, %177 : vector<1x8x64xf32>
    %179 = tpu.concatenate %115, %136, %157, %178 in 2 : vector<1x8x64xf32>, vector<1x8x64xf32>, vector<1x8x64xf32>, vector<1x8x64xf32> -> vector<1x8x256xf32>
    %180 = arith.negf %5 : vector<1x8x256xf32>
    %181 = math.exp %180 : vector<1x8x256xf32>
    %cst_31 = arith.constant 1.000000e+00 : f32
    %182 = vector.broadcast %cst_31 : f32 to vector<1x8x256xf32>
    %183 = arith.addf %182, %181 : vector<1x8x256xf32>
    %184 = arith.divf %182, %183 : vector<1x8x256xf32>
    %185 = arith.mulf %5, %184 : vector<1x8x256xf32>
    %186 = arith.mulf %179, %185 : vector<1x8x256xf32>
    %187 = arith.mulf %186, %186 : vector<1x8x256xf32>
    %cst_32 = arith.constant dense<0.000000e+00> : vector<1x8xf32>
    %188 = vector.multi_reduction <add>, %187, %cst_32 [2] : vector<1x8x256xf32> to vector<1x8xf32>
    %189 = vector.shape_cast %188 : vector<1x8xf32> to vector<1x8x1xf32>
    %cst_33 = arith.constant 2.560000e+02 : f32
    %190 = vector.broadcast %cst_33 : f32 to vector<1x8x1xf32>
    %191 = arith.divf %189, %190 : vector<1x8x1xf32>
    %cst_34 = arith.constant 9.99999974E-6 : f32
    %192 = vector.broadcast %cst_34 : f32 to vector<1x8x1xf32>
    %193 = arith.addf %191, %192 : vector<1x8x1xf32>
    %194 = math.rsqrt %193 : vector<1x8x1xf32>
    %195 = vector.broadcast %194 : vector<1x8x1xf32> to vector<1x8x256xf32>
    %196 = arith.mulf %186, %195 : vector<1x8x256xf32>
    %c0_35 = arith.constant 0 : index
    %c0_36 = arith.constant 0 : index
    %197 = vector.load %arg8[%c0_35, %c0_36] : memref<1x256xf32, #tpu.memory_space<vmem>>, vector<1x256xf32>
    %198 = vector.shape_cast %197 : vector<1x256xf32> to vector<1x1x256xf32>
    %199 = vector.broadcast %198 : vector<1x1x256xf32> to vector<1x8x256xf32>
    %200 = arith.mulf %196, %199 : vector<1x8x256xf32>
    %201 = vector.shape_cast %200 : vector<1x8x256xf32> to vector<8x256xf32>
    %202 = arith.truncf %201 : vector<8x256xf32> to vector<8x256xbf16>
    %c0_37 = arith.constant 0 : index
    %c0_38 = arith.constant 0 : index
    %203 = vector.load %arg9[%c0_37, %c0_38] : memref<256x128xbf16, #tpu.memory_space<vmem>>, vector<256x128xbf16>
    %cst_39 = arith.constant dense<0.000000e+00> : vector<8x128xf32>
    %204 = tpu.matmul %202, %203, %cst_39 {dimension_numbers = #tpu.dot_dimension_numbers<[1], [0], [0], [1], [0, 0, 1, 1], [], []>} : vector<8x256xbf16>, vector<256x128xbf16>, vector<8x128xf32> -> vector<8x128xf32>
    %c0_40 = arith.constant 0 : index
    %c0_41 = arith.constant 0 : index
    %205 = vector.load %arg10[%c0_40, %c0_41] : memref<1x128xf32, #tpu.memory_space<vmem>>, vector<1x128xf32>
    %206 = vector.broadcast %205 : vector<1x128xf32> to vector<8x128xf32>
    %207 = arith.addf %204, %206 : vector<8x128xf32>
    %208 = vector.shape_cast %207 : vector<8x128xf32> to vector<1x8x128xf32>
    %209 = arith.truncf %208 : vector<1x8x128xf32> to vector<1x8x128xbf16>
    %c0_42 = arith.constant 0 : index
    %c0_43 = arith.constant 0 : index
    %c0_44 = arith.constant 0 : index
    %210 = vector.load %arg11[%c0_42, %c0_43, %c0_44] : memref<1x8x128xbf16, #tpu.memory_space<vmem>>, vector<1x8x128xbf16>
    tpu.vector_store %arg11[%c0_42, %c0_43, %c0_44], %209 {strides = array<i32>} : memref<1x8x128xbf16, #tpu.memory_space<vmem>>, vector<1x8x128xbf16>,
    return
  }
  func.func @transform_0(%arg0: i32) -> (i32, i32, i32) {
    %c0_i32 = arith.constant 0 : i32
    %c0_i32_0 = arith.constant 0 : i32
    %c0_i32_1 = arith.constant 0 : i32
    return %arg0, %c0_i32, %c0_i32_0 : i32, i32, i32
  }
  func.func @transform_1(%arg0: i32) -> (i32, i32) {
    %c0_i32 = arith.constant 0 : i32
    %c0_i32_0 = arith.constant 0 : i32
    %c0_i32_1 = arith.constant 0 : i32
    return %c0_i32, %c0_i32_0 : i32, i32
  }
  func.func @transform_2(%arg0: i32) -> (i32, i32) {
    %c0_i32 = arith.constant 0 : i32
    %c0_i32_0 = arith.constant 0 : i32
    %c0_i32_1 = arith.constant 0 : i32
    return %c0_i32, %c0_i32_0 : i32, i32
  }
  func.func @transform_3(%arg0: i32) -> (i32, i32) {
    %c0_i32 = arith.constant 0 : i32
    %c0_i32_0 = arith.constant 0 : i32
    %c0_i32_1 = arith.constant 0 : i32
    return %c0_i32, %c0_i32_0 : i32, i32
  }
  func.func @transform_4(%arg0: i32) -> (i32, i32) {
    %c0_i32 = arith.constant 0 : i32
    %c0_i32_0 = arith.constant 0 : i32
    %c0_i32_1 = arith.constant 0 : i32
    return %c0_i32, %c0_i32_0 : i32, i32
  }
  func.func @transform_5(%arg0: i32) -> (i32, i32) {
    %c0_i32 = arith.constant 0 : i32
    %c0_i32_0 = arith.constant 0 : i32
    %c0_i32_1 = arith.constant 0 : i32
    return %c0_i32, %c0_i32_0 : i32, i32
  }
  func.func @transform_6(%arg0: i32) -> (i32, i32) {
    %c0_i32 = arith.constant 0 : i32
    %c0_i32_0 = arith.constant 0 : i32
    %c0_i32_1 = arith.constant 0 : i32
    return %c0_i32, %c0_i32_0 : i32, i32
  }
  func.func @transform_7(%arg0: i32) -> (i32, i32) {
    %c0_i32 = arith.constant 0 : i32
    %c0_i32_0 = arith.constant 0 : i32
    %c0_i32_1 = arith.constant 0 : i32
    return %c0_i32, %c0_i32_0 : i32, i32
  }
  func.func @transform_8(%arg0: i32) -> (i32, i32) {
    %c0_i32 = arith.constant 0 : i32
    %c0_i32_0 = arith.constant 0 : i32
    %c0_i32_1 = arith.constant 0 : i32
    return %c0_i32, %c0_i32_0 : i32, i32
  }
  func.func @transform_9(%arg0: i32) -> (i32, i32) {
    %c0_i32 = arith.constant 0 : i32
    %c0_i32_0 = arith.constant 0 : i32
    %c0_i32_1 = arith.constant 0 : i32
    return %c0_i32, %c0_i32_0 : i32, i32
  }
  func.func @transform_10(%arg0: i32) -> (i32, i32, i32) {
    %c0_i32 = arith.constant 0 : i32
    %c0_i32_0 = arith.constant 0 : i32
    %c0_i32_1 = arith.constant 0 : i32
    return %arg0, %c0_i32, %c0_i32_0 : i32, i32, i32
  }
}

</mosaic_0001>

<bundles_post_ra>
// kernel: tpu_custom_call.1
= control target key start
LH: loop header
LB: loop body
LE: loop exit
PB: predicated region body
PF: predicated region fallthrough
CT: control target
= control target key end

     0   :  { %s3186_s0 = inlined_call_operand.hbm [shape: bf16[2,8,128], index: 0, kind: input, shape index: {}]   ;;  %s3187_s1 = inlined_call_operand.hbm [shape: bf16[128,896], index: 1, kind: input, shape index: {}]   ;;  %s3188_s2 = inlined_call_operand.hbm [shape: f32[4,512], index: 2, kind: input, shape index: {}]   ;;  %s3189_s3 = inlined_call_operand.vmem [shape: f32[1,512], index: 3, kind: input, shape index: {}]   ;;  %s3190_s4 = inlined_call_operand.vmem [shape: f32[1,4], index: 4, kind: input, shape index: {}]   ;;  %s3191_s5 = inlined_call_operand.vmem [shape: f32[1,4], index: 5, kind: input, shape index: {}]   ;;  %s3192_s6 = inlined_call_operand.vmem [shape: f32[1,4], index: 6, kind: input, shape index: {}]   ;;  %s3193_s7 = inlined_call_operand.vmem [shape: f32[1,256], index: 7, kind: input, shape index: {}]   ;;  %s3194_s8 = inlined_call_operand.hbm [shape: bf16[256,128], index: 8, kind: input, shape index: {}]   ;;  %s3195_s9 = inlined_call_operand.vmem [shape: f32[1,128], index: 9, kind: input, shape index: {}]   ;;  %s3196_s10 = inlined_call_operand.hbm [shape: bf16[2,8,128], index: 10, kind: output, shape index: {}]  }
   0x1   :  { %3202 = sst [smem:[#allocation17_spill]] %s3187_s1 }
   0x2   :  { %3203 = sst [smem:[#allocation18_spill]] %s3188_s2 }
   0x3   :  { %3204 = sst [smem:[#allocation19_spill]] %s3194_s8 }
   0x4   :  { %15 = vsyncpa [#allocation3], 0 }
   0x5   :  { %17 = vsyncpa [#allocation3 + $0x1], 0 }
   0x6   :  { %18 = vsyncpa [#allocation6], 0 }
   0x7   :  { %19 = vsyncpa [#allocation9], 0 }
   0x8   :  { %20 = vsyncpa [#allocation4], 0 }
   0x9   :  { %22 = vsyncpa [#allocation4 + $0x1], 0  ;;  %s2801_s13 = smov 0   ;;  %s2803_s14 = smov 0  }
   0xa   :  { %s2805_s15 = smov 0   ;;  %s2807_s16 = smov 0  }
   0xb LB: > { %3205 = sst [smem:[#allocation15_spill]] %s2723_s15  ;;  %s2822_s17 = sadd.s32 4294967295, %s2727_s16   ;;  %s2727_s16 = sphi %s2807_s16, %s3230_s16   ;;  %s2723_s15 = sphi %s2805_s15, %s3227_s15   ;;  %s2719_s14 = sphi %s2803_s14, %s3229_s14   ;;  %s2715_s13 = sphi %s2801_s13, %s3228_s13  }
   0xc   : > { %s2123_s18 = sadd.s32 4294967294, %s2727_s16   ;;  %p48_p0 = scmp.ne.s32.totalorder %s2719_s14, %s2715_s13 }
   0xd   : > { %p3197_p1 = scmp.eq.s32.totalorder %s2822_s17, 0  ;;  %p267_p3 = scmp.eq.s32.totalorder %s2123_s18, 1 }
   0xe   : > { %p2124_p5 = scmp.ge.s32.totalorder %s2727_s16, 1  ;;  %p274_p7 = scmp.lt.s32.totalorder %s2727_s16, 3 }
   0xf   : > { %p2831_p4 = por %p3197_p1, %p48_p0  ;;  %p2836_p6 = por %p267_p3, %p48_p0 }
  0x10   : > { %p2841_p8 = pnand %p2124_p5, %p274_p7  ;;  %s2729_s22 = smov [#allocation5]  }
  0x11   : > { %s3206_s19 = scalar_select %p2831_p4, 1, 0 }
  0x12   : > { %s3207_s20 = scalar_select %p2836_p6, 1, 0 }
  0x13   : > { %s3208_s21 = scalar_select %p2841_p8, 1, 0 }
  0x14   : > { %s286_s23 = sshll.u32 %s2729_s22, 4  ;;  %p2328_p9 = pneg %p2841_p8  ;;  %s287_s23 = int_to_ptr.vmem [resolvable:$true] %s286_s23 }
  0x15   : > { %s2730_s25 = smov [#allocation7]   ;;  %s2731_s27 = smov [#allocation8]  }
  0x16   : > { %p2850_p11 = pnand %p2328_p9, %p3197_p1  ;;  %s300_s26 = sshll.u32 %s2730_s25, 4  ;;  %s301_s26 = int_to_ptr.vmem [resolvable:$true] %s300_s26 }
  0x17   : > { %s325_s28 = sshll.u32 %s2731_s27, 4  ;;  %s2560_s29 = scalar_lea.vmem %s287_s23, 7168  ;;  %s326_s28 = int_to_ptr.vmem [resolvable:$true] %s325_s28 }
  0x18   : > { %p2551_p12 = pneg %p2850_p11  ;;  %p2561_p13 = scmp.ne.s32.totalorder %s287_s23, %s2560_s29 }
  0x19   : > { %p2568_p5 = scmp.lt.s32.totalorder %s287_s23, %s287_s23  ;;  %p2569_p7 = scmp.lt.s32.totalorder %s2560_s29, %s2560_s29 }
  0x1a   : > { %p2563_p0 = pnand %p2561_p13, %p2551_p12 }
  0x1b   : > { %p2570_p9 = por %p2569_p7, %p2568_p5 }
  0x1c   : > { %p2564_p3 = pneg %p2563_p0 }
  0x1e   : > { %p2571_p10 = pnand %p2570_p9, %p2564_p3 }
  0x20   : > { %2574 = shalt.err (!%p2571_p10)
}
  0x21   : > { %s2732_s30 = smov 448   ;;  %s2733_s11 = smov 28  }
  0x22   : > { %s3210_s1 = sld [smem:[#allocation17_spill]]  ;;  %s2586_s22 = scalar_lea.vmem %s301_s26, 256 }
  0x23   : > { %p2587_p1 = scmp.ne.s32.totalorder %s301_s26, %s2586_s22  ;;  %p2594_p2 = scmp.lt.s32.totalorder %s301_s26, %s301_s26 }
  0x24   : > { %p2595_p6 = scmp.lt.s32.totalorder %s2586_s22, %s2586_s22 }
  0x25   : > { %p2589_p13 = pnand %p2587_p1, %p2551_p12 }
  0x26   : > { %p2596_p5 = por %p2595_p6, %p2594_p2 }
  0x27   : > { %p2590_p0 = pneg %p2589_p13 }
  0x28   : > { %2331 = dma.hbm_to_vmem [thread:$0]  (!%p2850_p11), %s3210_s1, 7168, %s287_s23, [#allocation6], %s2732_s30, %s2732_s30, %s2733_s11  }
  0x29   : > { %p2597_p3 = pnand %p2596_p5, %p2590_p0 }
  0x2b   : > { %2600 = shalt.err (!%p2597_p3)
}
  0x2c   : > { %s3211_s2 = sld [smem:[#allocation18_spill]]  ;;  %s2612_s23 = scalar_lea.vmem %s326_s28, 2048 }
  0x2d   : > { %p2613_p10 = scmp.ne.s32.totalorder %s326_s28, %s2612_s23  ;;  %p2620_p9 = scmp.lt.s32.totalorder %s326_s28, %s326_s28 }
  0x2e   : > { %p2621_p13 = scmp.lt.s32.totalorder %s2612_s23, %s2612_s23 }
  0x2f   : > { %p2615_p7 = pnand %p2613_p10, %p2551_p12 }
  0x30   : > { %p2622_p4 = por %p2621_p13, %p2620_p9 }
  0x31   : > { %p2616_p1 = pneg %p2615_p7 }
  0x32   : > { %2334 = dma.hbm_to_vmem [thread:$0]  (!%p2850_p11), %s3211_s2, 256, %s301_s26, [#allocation6]  }
  0x33   : > { %p2623_p2 = pnand %p2622_p4, %p2616_p1 }
  0x35   : > { %2626 = shalt.err (!%p2623_p2)
}
  0x36   : > { %s2734_s29 = smov 64   ;;  %s2735_s26 = smov 4  }
  0x37   : > { %s3212_s8 = sld [smem:[#allocation19_spill]]  ;;  %s2881_s12 = sadd.s32 1, %s2727_s16  }
  0x38   : > { %s32_s18 = ssub.s32 %s2727_s16, %s2881_s12  ;;  %s35_s22 = sadd.s32 1, %s2723_s15 }
  0x39   : > { %p33_p4 = scmp.eq.s32.totalorder %s32_s18, 0  ;;  %p42_p6 = scmp.ne.s32.totalorder %s2723_s15, %s2719_s14 }
  0x3a   : > { %p43_p12 = scmp.eq.s32.totalorder %s2727_s16, 0  ;;  %p2349_p0 = scmp.lt.s32.totalorder %s2727_s16, 2 }
  0x3b   : > { %s2891_s25 = scalar_select %p33_p4, %s2723_s15, %s35_s22  }
  0x3c   : > { %p44_p5 = por %p43_p12, %p42_p6  ;;  %p3214_p3 = scmp.eq.s32.totalorder %s2822_s17, 1 }
  0x3d   : > { %2337 = dma.hbm_to_vmem [thread:$0]  (!%p2850_p11), %s3212_s8, 2048, %s326_s28, [#allocation9], %s2734_s29, %s2734_s29, %s2735_s26  }
  0x3e   : > { %3213 = sst [smem:[#allocation16_spill]] %s2891_s25  ;;  %p2895_p10 = por %p3214_p3, %p42_p6 }
  0x3f   : > { %s342_s24 = sand.u32 1, %s2723_s15   ;;  %s2130_s23 = sshll.u32 %s2727_s16, 6 }
  0x40   : > { %s3215_s27 = scalar_select %p2895_p10, 1, 0 }
  0x41   : > { %s2129_s28 = sshll.u32 %s342_s24, 2  ;;  %s2904_s30 = scalar_lea.hbm %s3186_s0, %s2130_s23 }
  0x42   : > { %s346_s11 = scalar_lea.vmem [#allocation2], %s2129_s28  ;;  %p2906_p11 = pnand %p2349_p0, %p44_p5 }
  0x43   : > { %s353_s18 = sshll.u32 %s346_s11, 4  ;;  %s343_s1 = scalar_lea.sflag [#allocation3], %s342_s24  ;;  %s354_s18 = int_to_ptr.vmem [resolvable:$true] %s353_s18 }
  0x44   : > { %s2627_s2 = scalar_lea.hbm %s2904_s30, 64  ;;  %p2629_p1 = pneg %p2906_p11 }
  0x45   : > { %p2628_p7 = scmp.ne.s32.totalorder %s2904_s30, %s2627_s2  ;;  %s2632_s26 = scalar_lea.hbm %s3186_s0, 128 }
  0x46   : > { %p2633_p2 = scmp.lt.s32.totalorder %s2904_s30, %s3186_s0  ;;  %p2634_p4 = scmp.lt.s32.totalorder %s2632_s26, %s2627_s2 }
  0x47   : > { %p2630_p9 = pnand %p2629_p1, %p2628_p7 }
  0x48   : > { %p2635_p6 = por %p2634_p4, %p2633_p2 }
  0x49   : > { %p2631_p13 = pneg %p2630_p9 }
  0x4b   : > { %p2636_p12 = pnand %p2635_p6, %p2631_p13 }
  0x4d   : > { %2639 = shalt.err (!%p2636_p12)
}
  0x4e   : > { %s2640_s11 = scalar_lea.vmem %s354_s18, 64  ;;  %s2736_s24 = smov [#allocation2]  }
  0x4f   : > { %p2641_p0 = scmp.ne.s32.totalorder %s354_s18, %s2640_s11  ;;  %s2645_s25 = sshll.u32 %s2736_s24, 4  ;;  %s2646_s25 = int_to_ptr.vmem [resolvable:$false] %s2645_s25 }
  0x50   : > { %s2647_s15 = scalar_lea.vmem %s2646_s25, 128  ;;  %p2648_p7 = scmp.lt.s32.totalorder %s354_s18, %s2646_s25 }
  0x51   : > { %p2643_p5 = pnand %p2641_p0, %p2629_p1  ;;  %p2649_p9 = scmp.lt.s32.totalorder %s2647_s15, %s2640_s11 }
  0x53   : > { %p2644_p3 = pneg %p2643_p5  ;;  %p2650_p10 = por %p2649_p9, %p2648_p7 }
  0x55   : > { %p2651_p8 = pnand %p2650_p10, %p2644_p3 }
  0x57   : > { %2654 = shalt.err (!%p2651_p8)
}
  0x58   : > { %2341 = dma.hbm_to_vmem [thread:$0]  (!%p2906_p11), %s2904_s30, 64, %s354_s18, %s343_s1  }
  0x59   : > { %p3217_p13 = scmp.ne.s32.totalorder %s3208_s21, 0 }
  0x5a   : > { %s2927_s2 = sand.u32 (!%p3217_p13), 1, %s2719_s14   ;;  %p3218_p8 = scmp.ne.s32.totalorder (!%p3217_p13), %s3206_s19, 0 }
  0x5b   : > { %362 = sbr.rel (%p3217_p13) target bundleno = 1351 (0x547), region = 60  ;;  %s2132_s8 = sshll.u32 (!%p3217_p13), %s2927_s2, 2 }
  0x5c   : > { %s365_s25 = scalar_lea.sflag (!%p3217_p13), [#allocation3], %s2927_s2  ;;  %s2933_s15 = scalar_lea.vmem (!%p3217_p13), [#allocation2], %s2132_s8 }
  0x60   : > { %2698 = dma.done.wait (%p3218_p8), %s365_s25, 64  }
  0x61   : > { %2700 = vsyncadd (%p3218_p8), %s365_s25, 4294967232  ;;  %p3219_p10 = scmp.eq.s32.totalorder %s2822_s17, 0 }
  0x63   : > { %2702 = dma.done.wait (%p3219_p10), [#allocation6], 7424   ;;  %p3220_p11 = pmov %p3219_p10 }
  0x64   : > { %p3221_p1 = pmov %p3219_p10 }
  0x65   : > { %2704 = vsyncadd (%p3220_p11), [#allocation6], 4294959872 }
  0x66   : > { %2706 = dma.done.wait (%p3221_p1), [#allocation9], 2048   ;;  %p3222_p2 = pmov %p3221_p1 }
  0x67   : > { %v2737_v0 = vmov 0   ;;  %v2413_v1 = vld [vmem:[#allocation5 + $0x18c] ss:$28 sps:$4 sm:$0xff]   ;;  %v2415_v2 = vld [vmem:[#allocation5 + $0x194] ss:$28 sps:$4 sm:$0xff]   ;;  %v2738_v37 = vmov 0.0   ;;  %v938_v59 = vlaneseq }
  0x68   : > { %2708 = vsyncadd (%p3222_p2), [#allocation9], 4294965248  ;;  %844 = vmatprep.mubr.bf16.mxu1 %v2737_v0  ;;  %803 = vmatprep.mubr.bf16.mxu0 %v2737_v0  ;;  %v2417_v3 = vld [vmem:[#allocation5 + $0x188] ss:$28 sps:$4 sm:$0xff]   ;;  %v2418_v4 = vld [vmem:[#allocation5 + $0x190] ss:$28 sps:$4 sm:$0xff]  }
  0x69   : > { %2403 = vset.pattern.permute.xlu1 %v2737_v0  ;;  %771 = vmatprep.subr.bf16.mxu0 %v2413_v1  ;;  %v2419_v5 = vld [vmem:[#allocation5 + $0x154] ss:$28 sps:$4 sm:$0xff]   ;;  %v2421_v6 = vld [vmem:[#allocation5 + $0x15c] ss:$28 sps:$4 sm:$0xff]   ;;  %v2427_v10 = vld [vmem:[#allocation5 + $0x124] ss:$28 sps:$4 sm:$0xff]  }
  0x6a   : > { %812 = vmatprep.subr.bf16.mxu1 %v2415_v2  ;;  %772 = vmatpush1.bf16.msra.mxu0 %v2417_v3  ;;  %v2423_v7 = vld [vmem:[#allocation5 + $0x150] ss:$28 sps:$4 sm:$0xff]   ;;  %v2424_v8 = vld [vmem:[#allocation5 + $0x158] ss:$28 sps:$4 sm:$0xff]   ;;  %v2430_v12 = vld [vmem:[#allocation5 + $0x120] ss:$28 sps:$4 sm:$0xff]  }
  0x6b   : > { %813 = vmatpush1.bf16.msra.mxu1 %v2418_v4  ;;  %773 = vmatprep.subr.bf16.mxu0 %v2419_v5  ;;  %v2425_v9 = vld [vmem:[#allocation5 + $0x11c] ss:$28 sps:$4 sm:$0xff]   ;;  %v2431_v13 = vld [vmem:[#allocation5 + $0xe4] ss:$28 sps:$4 sm:$0xff]   ;;  %v2433_v14 = vld [vmem:[#allocation5 + $0xec] ss:$28 sps:$4 sm:$0xff]  }
  0x6c   : > { %814 = vmatprep.subr.bf16.mxu1 %v2421_v6  ;;  %v2429_v11 = vld [vmem:[#allocation5 + $0x118] ss:$28 sps:$4 sm:$0xff]   ;;  %v2435_v15 = vld [vmem:[#allocation5 + $0xe0] ss:$28 sps:$4 sm:$0xff]   ;;  %v2436_v16 = vld [vmem:[#allocation5 + $0xe8] ss:$28 sps:$4 sm:$0xff]  }
  0x6d   : > { %v2437_v17 = vld [vmem:[#allocation5 + $0xac] ss:$28 sps:$4 sm:$0xff]   ;;  %v2439_v18 = vld [vmem:[#allocation5 + $0xb4] ss:$28 sps:$4 sm:$0xff]   ;;  %v2445_v22 = vld [vmem:[#allocation5 + $0x7c] ss:$28 sps:$4 sm:$0xff]  }
  0x6e   : > { %774 = vmatpush1.bf16.msra.mxu0 %v2423_v7  ;;  %v2441_v19 = vld [vmem:[#allocation5 + $0xa8] ss:$28 sps:$4 sm:$0xff]   ;;  %v2442_v20 = vld [vmem:[#allocation5 + $0xb0] ss:$28 sps:$4 sm:$0xff]   ;;  %v2448_v24 = vld [vmem:[#allocation5 + $0x78] ss:$28 sps:$4 sm:$0xff]  }
  0x6f   : > { %815 = vmatpush1.bf16.msra.mxu1 %v2424_v8  ;;  %775 = vmatprep.subr.bf16.mxu0 %v2425_v9  ;;  %v2443_v21 = vld [vmem:[#allocation5 + $0x74] ss:$28 sps:$4 sm:$0xff]   ;;  %v2449_v25 = vld [vmem:[#allocation5 + $0x3c] ss:$28 sps:$4 sm:$0xff]   ;;  %v2451_v26 = vld [vmem:[#allocation5 + $0x44] ss:$28 sps:$4 sm:$0xff]  }
  0x70   : > { %816 = vmatprep.subr.bf16.mxu1 %v2427_v10  ;;  %v2447_v23 = vld [vmem:[#allocation5 + $0x70] ss:$28 sps:$4 sm:$0xff]   ;;  %v2453_v27 = vld [vmem:[#allocation5 + $0x38] ss:$28 sps:$4 sm:$0xff]   ;;  %v2454_v28 = vld [vmem:[#allocation5 + $0x40] ss:$28 sps:$4 sm:$0xff]  }
  0x71   : > { %v2455_v29 = vld [vmem:[#allocation5 + $0x4] ss:$28 sps:$4 sm:$0xff]   ;;  %v2457_v30 = vld [vmem:[#allocation5 + $0xc] ss:$28 sps:$4 sm:$0xff]   ;;  %v2463_v33 = vld [vmem:[#allocation5 + $0x19c] ss:$28 sps:$4 sm:$0xff]  }
  0x72   : > { %776 = vmatpush1.bf16.msra.mxu0 %v2429_v11  ;;  %v2459_v31 = vld [vmem:[#allocation5] ss:$28 sps:$4 sm:$0xff]   ;;  %v2460_v32 = vld [vmem:[#allocation5 + $0x8] ss:$28 sps:$4 sm:$0xff]   ;;  %v2461_v35 = vld [vmem:[#allocation5 + $0x198] ss:$28 sps:$4 sm:$0xff]  }
  0x73   : > { %817 = vmatpush1.bf16.msra.mxu1 %v2430_v12  ;;  %777 = vmatprep.subr.bf16.mxu0 %v2431_v13  ;;  %v2951_v34 = vld [vmem:[%s2933_s15] sm:$0xf]  ;;  %v2467_v38 = vld [vmem:[#allocation5 + $0x164] ss:$28 sps:$4 sm:$0xff]   ;;  %v2471_v41 = vld [vmem:[#allocation5 + $0x12c] ss:$28 sps:$4 sm:$0xff]  }
  0x74   : > { %818 = vmatprep.subr.bf16.mxu1 %v2433_v14  ;;  %v2464_v36 = vld [vmem:[#allocation5 + $0x1a0] ss:$28 sps:$4 sm:$0xff]   ;;  %v2468_v40 = vld [vmem:[#allocation5 + $0x168] ss:$28 sps:$4 sm:$0xff]   ;;  %vm2739_vm0 = vmmov 0   ;;  %v2972_v60 = vshrl.u32 %v938_v59, 7 }
  0x75   : > { %v2465_v39 = vld [vmem:[#allocation5 + $0x160] ss:$28 sps:$4 sm:$0xff]   ;;  %v2469_v42 = vld [vmem:[#allocation5 + $0x128] ss:$28 sps:$4 sm:$0xff]   ;;  %v2472_v43 = vld [vmem:[#allocation5 + $0x130] ss:$28 sps:$4 sm:$0xff]  }
  0x76   : > { %778 = vmatpush1.bf16.msra.mxu0 %v2435_v15  ;;  %v2475_v44 = vld [vmem:[#allocation5 + $0xf4] ss:$28 sps:$4 sm:$0xff]   ;;  %v2479_v47 = vld [vmem:[#allocation5 + $0xbc] ss:$28 sps:$4 sm:$0xff]   ;;  %v2483_v50 = vld [vmem:[#allocation5 + $0x84] ss:$28 sps:$4 sm:$0xff]  }
  0x77   : > { %819 = vmatpush1.bf16.msra.mxu1 %v2436_v16  ;;  %779 = vmatprep.subr.bf16.mxu0 %v2437_v17  ;;  %v2473_v45 = vld [vmem:[#allocation5 + $0xf0] ss:$28 sps:$4 sm:$0xff]   ;;  %v2476_v46 = vld [vmem:[#allocation5 + $0xf8] ss:$28 sps:$4 sm:$0xff]   ;;  %v2480_v49 = vld [vmem:[#allocation5 + $0xc0] ss:$28 sps:$4 sm:$0xff]  }
  0x78   : > { %820 = vmatprep.subr.bf16.mxu1 %v2439_v18  ;;  %v2477_v48 = vld [vmem:[#allocation5 + $0xb8] ss:$28 sps:$4 sm:$0xff]   ;;  %v2481_v51 = vld [vmem:[#allocation5 + $0x80] ss:$28 sps:$4 sm:$0xff]   ;;  %v2484_v52 = vld [vmem:[#allocation5 + $0x88] ss:$28 sps:$4 sm:$0xff]  }
  0x79   : > { %v2487_v53 = vld [vmem:[#allocation5 + $0x4c] ss:$28 sps:$4 sm:$0xff]   ;;  %v2491_v56 = vld [vmem:[#allocation5 + $0x14] ss:$28 sps:$4 sm:$0xff]   ;;  %v934_v61 = vld [vmem:[#allocation7] sm:$0xff]  ;;  %v944_v62 = vsub.s32 7, %v2972_v60 }
  0x7a   : > { %780 = vmatpush1.bf16.msra.mxu0 %v2441_v19  ;;  %v2485_v54 = vld [vmem:[#allocation5 + $0x48] ss:$28 sps:$4 sm:$0xff]   ;;  %v2488_v55 = vld [vmem:[#allocation5 + $0x50] ss:$28 sps:$4 sm:$0xff]   ;;  %v2492_v58 = vld [vmem:[#allocation5 + $0x18] ss:$28 sps:$4 sm:$0xff]  }
  0x7b   : > { %821 = vmatpush1.bf16.msra.mxu1 %v2442_v20  ;;  %781 = vmatprep.subr.bf16.mxu0 %v2443_v21  ;;  %v2489_v57 = vld [vmem:[#allocation5 + $0x10] ss:$28 sps:$4 sm:$0xff]   ;;  %v2976_v63 = vsub.s32 3, %v2972_v60  ;;  %v945_v1 = vrot.slane %v934_v61, %v944_v62  ;;  %v1141_v3 = vsub.s32 6, %v2972_v60  ;;  %v2983_v4 = vsub.s32 2, %v2972_v60  ;;  %s2743_s26 = smov 64  }
  0x7c   : > { %822 = vmatprep.subr.bf16.mxu1 %v2445_v22  ;;  %v2740_v7 = vmov 1   ;;  %v2990_v8 = vsub.s32 0, %v2972_v60  ;;  %v2993_v9 = vsub.s32 1, %v2972_v60  ;;  %v1027_v11 = vsub.s32 4, %v2972_v60  ;;  %v3002_v14 = vld [vmem:[%s3189_s3] sm:$0xf] }
  0x7d   : > { %v965_v2 = vrot.slane %v945_v1, %v2976_v63  ;;  %v1142_v5 = vrot.slane %v934_v61, %v1141_v3  ;;  %2401 = vset.pattern.permute.xlu0 %v2740_v7  ;;  %v941_v10 = vrot.slane %v934_v61, %v2976_v63  ;;  %v1084_v12 = vsub.s32 5, %v2972_v60  ;;  %s2223_s15 = sshll.u32 %s2822_s17, 6  ;;  %s416_s1 = scalar_lea.vmem [#allocation10], %s2132_s8 }
  0x7e   : > { %782 = vmatpush1.bf16.msra.mxu0 %v2447_v23  ;;  %v1024_v13 = vrot.slane %v934_v61, %v2990_v8  ;;  %v1081_v15 = vrot.slane %v934_v61, %v2993_v9  ;;  %v1138_v16 = vrot.slane %v934_v61, %v2983_v4  ;;  %v1028_v18 = vrot.slane %v934_v61, %v1027_v11  ;;  %s2024_s19 = sshll.u32 %s416_s1, 4  ;;  %s2022_s18 = scalar_lea.hbm %s3196_s10, %s2223_s15  ;;  %s2025_s19 = int_to_ptr.vmem [resolvable:$true] %s2024_s19 }
  0x7f   : > { %823 = vmatpush1.bf16.msra.mxu1 %v2448_v24  ;;  %783 = vmatprep.subr.bf16.mxu0 %v2449_v25  ;;  %v1162_v6 = vrot.slane %v1142_v5, %v2983_v4  ;;  %v961_v17 = vrot.slane %v941_v10, %v2976_v63  ;;  %v1085_v19 = vrot.slane %v934_v61, %v1084_v12  ;;  %vm1016_vm1 = vcmask 1042432   ;;  %s2011_s22 = scalar_lea.sflag [#allocation4], %s2927_s2  ;;  %s2655_s23 = scalar_lea.vmem %s2025_s19, 64 }
  0x80   : > { %824 = vmatprep.subr.bf16.mxu1 %v2451_v26  ;;  %v983_v20 = vrot.slane %v3002_v14, %v2990_v8  ;;  %v1044_v21 = vrot.slane %v1024_v13, %v2990_v8  ;;  %vm1073_vm2 = vcmask 1041408   ;;  %v1101_v23 = vrot.slane %v1081_v15, %v2993_v9  ;;  %v935_v13 = vld [vmem:[#allocation7 + $0x8] sm:$0xff]  ;;  %p2656_p4 = scmp.ne.s32.totalorder %s2025_s19, %s2655_s23  ;;  %p3223_p6 = scmp.ne.s32.totalorder %s3215_s27, 0 }
  0x81   : > { %vm1130_vm3 = vcmask 1040384   ;;  %v1158_v24 = vrot.slane %v1138_v16, %v2983_v4  ;;  %v949_v15 = vrot.slane %v935_v13, %v2976_v63  ;;  %v1032_v16 = vrot.slane %v935_v13, %v2990_v8  ;;  %s2745_s29 = smov [#allocation10]  }
  0x82   : > { %784 = vmatpush1.bf16.msra.mxu0 %v2453_v27  ;;  %vm1257_vm6 = vcmask 1043456   ;;  %vm1380_vm8 = vcmask 64512   ;;  %vm1787_vm9 = vcmask 523264   ;;  %p2657_p12 = pnand %p2656_p4, %p3223_p6  ;;  %s2659_s17 = sshll.u32 %s2745_s29, 4  ;;  %s2660_s17 = int_to_ptr.vmem [resolvable:$false] %s2659_s17 }
  0x83   : > { %825 = vmatpush1.bf16.msra.mxu1 %v2454_v28  ;;  %785 = vmatprep.subr.bf16.mxu0 %v2455_v29  ;;  %s2661_s8 = scalar_lea.vmem %s2660_s17, 128  ;;  %p2662_p5 = scmp.lt.s32.totalorder %s2025_s19, %s2660_s17 }
  0x84   : > { %826 = vmatprep.subr.bf16.mxu1 %v2457_v30  ;;  %p2658_p0 = pneg %p2657_p12  ;;  %p2663_p3 = scmp.lt.s32.totalorder %s2661_s8, %s2655_s23 }
  0x86   : > { %786 = vmatpush1.bf16.msra.mxu0 %v2459_v31  ;;  %v987_v31 = vrot.slane %v3002_v14, %v2993_v9  ;;  %p2664_p7 = por %p2663_p3, %p2662_p5 }
  0x87   : > { %827 = vmatpush1.bf16.msra.mxu1 %v2460_v32  ;;  %853 = vmatprep.subr.bf16.mxu0 %v2463_v33  ;;  %v1048_v32 = vrot.slane %v1028_v18, %v2990_v8  ;;  %v1105_v33 = vrot.slane %v1085_v19, %v2993_v9  ;;  %v953_v18 = vrot.slane %v935_v13, %v944_v62 }
  0x88   : > { %2267 = vmatprep.subr.bf16.mxu1 %v2738_v37  ;;  %v969_v19 = vrot.slane %v949_v15, %v2976_v63  ;;  %p2665_p9 = pnand %p2664_p7, %p2658_p0 }
  0x89   : > { %804 = vmatmul.mubr.bf16.vlgmr.msra.gmra.mxu0 %v2951_v34 }
  0x8a   : > { %845 = vmatmul.mubr.bf16.vlgmr.msra.gmra.mxu1 %v2951_v34  ;;  %854 = vmatpush1.bf16.msra.mxu0 %v2461_v35 }
  0x8b   : > { %2268 = vmatpush3.bf16.msra.mxu1 %v2464_v36  ;;  %855 = vmatprep.subr.bf16.mxu0 %v2467_v38 }
  0x8c   : > { %2269 = vmatprep.subr.bf16.mxu1 %v2738_v37  ;;  %885 = vmatprep.mubr.bf16.mxu0 %v2737_v0 }
  0x8d   : > { %2283 = vmatprep.mubr.msk.bf16.mxu1 %vm2739_vm0, %v2738_v37 }
  0x8e   : > { %856 = vmatpush1.bf16.msra.mxu0 %v2465_v39 }
  0x8f   : > { %2270 = vmatpush3.bf16.msra.mxu1 %v2468_v40  ;;  %857 = vmatprep.subr.bf16.mxu0 %v2471_v41 }
  0x90   : > { %2271 = vmatprep.subr.bf16.mxu1 %v2738_v37 }
  0x92   : > { %858 = vmatpush1.bf16.msra.mxu0 %v2469_v42 }
  0x93   : > { %2272 = vmatpush3.bf16.msra.mxu1 %v2472_v43  ;;  %859 = vmatprep.subr.bf16.mxu0 %v2475_v44 }
  0x94   : > { %2273 = vmatprep.subr.bf16.mxu1 %v2738_v37 }
  0x96   : > { %860 = vmatpush1.bf16.msra.mxu0 %v2473_v45 }
  0x97   : > { %2274 = vmatpush3.bf16.msra.mxu1 %v2476_v46  ;;  %861 = vmatprep.subr.bf16.mxu0 %v2479_v47 }
  0x98   : > { %2275 = vmatprep.subr.bf16.mxu1 %v2738_v37 }
  0x9a   : > { %862 = vmatpush1.bf16.msra.mxu0 %v2477_v48 }
  0x9b   : > { %2276 = vmatpush3.bf16.msra.mxu1 %v2480_v49  ;;  %863 = vmatprep.subr.bf16.mxu0 %v2483_v50 }
  0x9c   : > { %2277 = vmatprep.subr.bf16.mxu1 %v2738_v37 }
  0x9e   : > { %864 = vmatpush1.bf16.msra.mxu0 %v2481_v51 }
  0x9f   : > { %2278 = vmatpush3.bf16.msra.mxu1 %v2484_v52  ;;  %865 = vmatprep.subr.bf16.mxu0 %v2487_v53 }
  0xa0   : > { %2279 = vmatprep.subr.bf16.mxu1 %v2738_v37 }
  0xa2   : > { %866 = vmatpush1.bf16.msra.mxu0 %v2485_v54 }
  0xa3   : > { %2280 = vmatpush3.bf16.msra.mxu1 %v2488_v55  ;;  %867 = vmatprep.subr.bf16.mxu0 %v2491_v56 }
  0xa4   : > { %2281 = vmatprep.subr.bf16.mxu1 %v2738_v37 }
  0xa6   : > { %868 = vmatpush1.bf16.msra.mxu0 %v2489_v57 }
  0xa7   : > { %2282 = vmatpush3.bf16.msra.mxu1 %v2492_v58  ;;  %2287 = vmatprep.subr.mxu0 %v2738_v37 }
  0xa9   : > { %886 = vmatmul.mubr.bf16.vlgmr.msra.gmra.mxu0 %v2951_v34 }
  0xaa   : > { %2284 = vmatmul.mubr.bf16.vlgmr.msra.gmra.mxu1 %v2951_v34  ;;  %2289 = vmatprep.mubr.msk.f32.mxu0 %vm2739_vm0, %v2738_v37 }
 0x149   : > { %v3016_v25 = vpop.f32.mrf.mxu0 }
 0x14a   : > { %v846_v22 = vpop.f32.mrf.mxu1 }
 0x14b   : > { %v974_v26 = vmul.f32 %v961_v17, %v846_v22  ;;  %v1008_v27 = vrot.slane %v846_v22, 5  ;;  %v1065_v28 = vrot.slane %v846_v22, 6  ;;  %v1122_v29 = vrot.slane %v846_v22, 7  ;;  %v3022_v34 = vpop.f32.mrf.mxu0  ;;  %v2197_v22 = vld [vmem:[%s3190_s4] ss:$0 sm:$0xff] }
 0x14c   : > { %v848_v30 = vpop.f32.mrf.mxu1  ;;  %v1089_v17 = vrot.slane %v935_v13, %v2993_v9 }
 0x14d   : > { %v1000_v35 = vadd.f32 %v983_v20, %v974_v26  ;;  %v1017_v36 = vsel %vm1016_vm1, 0.0, %v1008_v27  ;;  %v1074_v38 = vsel %vm1073_vm2, 0.0, %v1065_v28  ;;  %v1131_v39 = vsel %vm1130_vm3, 0.0, %v1122_v29  ;;  %v809_v45 = vpop.f32.mrf.mxu0 }
 0x14e   : > { %v1057_v40 = vmul.f32 %v1044_v21, %v1017_v36  ;;  %v1114_v41 = vmul.f32 %v1101_v23, %v1074_v38  ;;  %v1171_v42 = vmul.f32 %v1158_v24, %v1131_v39  ;;  %v975_v43 = vmul.f32 %v965_v2, %v848_v30  ;;  %v850_v44 = vpop.f32.mrf.mxu1 }
 0x14f   : > { %v1009_v46 = vrot.slane %v848_v30, 5  ;;  %v1066_v47 = vrot.slane %v848_v30, 6  ;;  %v1123_v48 = vrot.slane %v848_v30, 7  ;;  %v810_v52 = vpop.f32.mrf.mxu0  ;;  %v991_v20 = vrot.slane %v3002_v14, %v2983_v4 }
 0x150   : > { %v1061_v49 = vadd.f32 %v1057_v40, %v1000_v35  ;;  %v1001_v50 = vadd.f32 %v987_v31, %v975_v43  ;;  %v851_v51 = vpop.f32.mrf.mxu1  ;;  %v1052_v21 = vrot.slane %v1032_v16, %v2990_v8  ;;  %v1036_v23 = vrot.slane %v935_v13, %v1027_v11 }
 0x151   : > { %v1018_v53 = vsel %vm1016_vm1, 0.0, %v1009_v46  ;;  %v1075_v54 = vsel %vm1073_vm2, 0.0, %v1066_v47  ;;  %v1132_v55 = vsel %vm1130_vm3, 0.0, %v1123_v48  ;;  %v1109_v26 = vrot.slane %v1089_v17, %v2993_v9 }
 0x152   : > { %v1118_v56 = vadd.f32 %v1114_v41, %v1061_v49  ;;  %v1058_v57 = vmul.f32 %v1048_v32, %v1018_v53  ;;  %v1115_v58 = vmul.f32 %v1105_v33, %v1075_v54  ;;  %v1172_v61 = vmul.f32 %v1162_v6, %v1132_v55 }
 0x153   : > { %v1146_v6 = vrot.slane %v935_v13, %v2983_v4  ;;  %v973_v27 = vrot.slane %v953_v18, %v2976_v63  ;;  %v1093_v28 = vrot.slane %v935_v13, %v1084_v12  ;;  %v1150_v29 = vrot.slane %v935_v13, %v1141_v3 }
 0x154   : > { %v1062_v1 = vadd.f32 %v1058_v57, %v1001_v50  ;;  %v3030_v2 = vadd.f32 %v1171_v42, %v1118_v56  ;;  %v995_v38 = vrot.slane %v3002_v14, %v2976_v63  ;;  %v1056_v3 = vrot.slane %v1036_v23, %v2990_v8 }
 0x155   : > { %v1166_v35 = vrot.slane %v1146_v6, %v2983_v4  ;;  %v1113_v45 = vrot.slane %v1093_v28, %v2993_v9  ;;  %v1170_v14 = vrot.slane %v1150_v29, %v2983_v4 }
 0x156   : > { %v1119_v5 = vadd.f32 %v1115_v58, %v1062_v1 }
 0x158   : > { %v3032_v10 = vadd.f32 %v1172_v61, %v1119_v5 }
 0x169   : > { %v887_v24 = vpop.f32.mrf.mxu0 }
 0x16a   : > { %v928_v62 = vpop.f32.mrf.mxu1  ;;  %v976_v30 = vmul.f32 %v969_v19, %v887_v24  ;;  %v1010_v31 = vrot.slane %v887_v24, 5  ;;  %v1067_v32 = vrot.slane %v887_v24, 6  ;;  %v1124_v33 = vrot.slane %v887_v24, 7 }
 0x16b   : > { %v3056_v36 = vadd.f32 %v2197_v22, %v928_v62  ;;  %v889_v11 = vpop.f32.mrf.mxu0 }
 0x16c   : > { %v2285_v39 = vpop.f32.mrf.mxu1  ;;  %v1002_v40 = vadd.f32 %v991_v20, %v976_v30  ;;  %v1019_v41 = vsel %vm1016_vm1, 0.0, %v1010_v31  ;;  %v1076_v12 = vsel %vm1073_vm2, 0.0, %v1067_v32  ;;  %v1133_v44 = vsel %vm1130_vm3, 0.0, %v1124_v33 }
 0x16d   : > { %v1059_v42 = vmul.f32 %v1052_v21, %v1019_v41  ;;  %v1116_v43 = vmul.f32 %v1109_v26, %v1076_v12  ;;  %v891_v47 = vpop.f32.mrf.mxu0  ;;  %v1218_v48 = vand.u32 2147483647, %v3056_v36  ;;  %v977_v49 = vmul.f32 %v973_v27, %v889_v11  ;;  %v1233_v21 = vld [vmem:[%s3191_s5] sm:$0x1] }
 0x16e   : > { %v931_v46 = vpop.f32.mrf.mxu1  ;;  %v1011_v63 = vrot.slane %v889_v11, 5  ;;  %v1173_v51 = vmul.f32 %v1166_v35, %v1133_v44  ;;  %v1068_v52 = vrot.slane %v889_v11, 6  ;;  %v1125_v53 = vrot.slane %v889_v11, 7 }
 0x16f   : > { %v1063_v50 = vadd.f32 %v1059_v42, %v1002_v40  ;;  %v892_v55 = vpop.f32.mrf.mxu0  ;;  %v1219_v56 = vsub.f32 0.0, %v1218_v48  ;;  %v1003_v57 = vadd.f32 %v995_v38, %v977_v49  ;;  %v1234_v23 = vmul.f32 1.442695, %v1233_v21 }
 0x170   : > { %v2286_v54 = vpop.f32.mrf.mxu1  ;;  %v1020_v58 = vsel %vm1016_vm1, 0.0, %v1011_v63  ;;  %v1077_v5 = vsel %vm1073_vm2, 0.0, %v1068_v52  ;;  %v1134_v13 = vsel %vm1130_vm3, 0.0, %v1125_v53  ;;  %v1215_v40 = vmax.f32 %v3056_v36, 0.0 }
 0x171   : > { %v1120_v61 = vadd.f32 %v1116_v43, %v1063_v50  ;;  %v1060_v1 = vmul.f32 %v1056_v3, %v1020_v58  ;;  %v1220_v15 = vmul.f32 1.442695, %v1219_v56  ;;  %v1117_v16 = vmul.f32 %v1113_v45, %v1077_v5  ;;  %v3088_v56 = vld [vmem:[%s3192_s6] ss:$0 sm:$0xff] }
 0x172   : > { %v1174_v4 = vmul.f32 %v1170_v14, %v1134_v13  ;;  %vm1216_vm5 = vcmp.ne.f32.partialorder %v3056_v36, %v3056_v36  ;;  %v2741_v49 = vmov 3   ;;  %v2742_v55 = vmov 2  }
 0x173   : > { %v1064_v17 = vadd.f32 %v1060_v1, %v1003_v57  ;;  %v1177_v18 = vadd.f32 %v1173_v51, %v1120_v61  ;;  %2509 = vpow2.f32 %v1220_v15  ;;  %v2193_v57 = vmul.f32 -1.442695, %v3030_v2 }
 0x174   : > { %v2194_v58 = vmul.f32 -1.442695, %v3032_v10 }
 0x175   : > { %v1121_v19 = vadd.f32 %v1117_v16, %v1064_v17  ;;  %v2195_v6 = vmul.f32 -1.442695, %v1177_v18 }
 0x177   : > { %2511 = vpow2.f32 %v2195_v6  ;;  %v1178_v20 = vadd.f32 %v1174_v4, %v1121_v19 }
 0x179   : > { %v2196_v22 = vmul.f32 -1.442695, %v1178_v20 }
 0x17b   : > { %2513 = vpow2.f32 %v2196_v22 }
 0x17c   : > { %2515 = vpow2.f32 %v1234_v23 }
 0x180   : > { %v2510_v24 = vpop.eup %2509 }
 0x181   : > { %v1222_v26 = vadd.f32 1.0, %v2510_v24  ;;  %v1225_v30 = vmul.f32 -0.5, %v2510_v24  ;;  %v1228_v33 = vand.u32 2147483647, %v2510_v24 }
 0x183   : > { %2517 = vlog2.f32 %v1222_v26  ;;  %v1226_v32 = vadd.f32 1.0, %v1225_v30  ;;  %vm1229_vm4 = vcmp.lt.f32.partialorder %v1228_v33, 0.0004427343  ;;  %v2744_v30 = vmov -1e+30  }
 0x184   : > { %v2512_v62 = vpop.eup %2511 }
 0x185   : > { %v1193_v27 = vadd.f32 1.0, %v2512_v62  ;;  %v1227_v39 = vmul.f32 %v2510_v24, %v1226_v32 }
 0x187   : > { %2519 = vrcp.f32 %v1193_v27  ;;  %v1263_v27 = vand.u32 127, %v938_v59 }
 0x188   : > { %v2514_v28 = vpop.eup %2513 }
 0x189   : > { %v1194_v29 = vadd.f32 1.0, %v2514_v28  ;;  %v2516_v31 = vpop.eup %2515  ;;  %vm1264_vm7 = vcmp.ge.s32.totalorder %v2972_v60, %v1263_v27 }
 0x18a   : > { %v1236_v35 = vsub.f32 0.0, %v2516_v31  ;;  %v1265_v31 = vsel %vm1264_vm7, 0.0, %v2744_v30 }
 0x18b   : > { %2521 = vrcp.f32 %v1194_v29 }
 0x18c   : > { %v1241_v3 = vrot.slane %v1236_v35, %v2990_v8  ;;  %2523 = vpow2.f32 %v2193_v57 }
 0x18d   : > { %2525 = vpow2.f32 %v2194_v58 }
 0x190   : > { %v2518_v11 = vpop.eup %2517 }
 0x191   : > { %v1224_v38 = vmul.f32 0.6931472, %v2518_v11 }
 0x193   : > { %v1230_v12 = vsel %vm1229_vm4, %v1227_v39, %v1224_v38 }
 0x194   : > { %v2520_v41 = vpop.eup %2519  ;;  %v1231_v42 = vadd.f32 %v1230_v12, %v1215_v40 }
 0x195   : > { %v1205_v43 = vmul.f32 %v2520_v41, %v1177_v18 }
 0x196   : > { %v1232_v44 = vsel %vm1216_vm5, %v3056_v36, %v1231_v42 }
 0x197   : > { %2288 = vmatpush3.xpose.msra.mxu0 %v1205_v43  ;;  %1475 = vperm.xlu0 %2401, %v1232_v44   ;;  %v1243_v46 = vmul.f32 %v1241_v3, %v1232_v44 }
 0x198   : > { %v2522_v45 = vpop.eup %2521  ;;  %2292 = vmatprep.subr.mxu0 %v2738_v37 }
 0x199   : > { %v1206_v47 = vmul.f32 %v2522_v45, %v1178_v20  ;;  %v1245_v48 = vrot.slane %v1243_v46, 7  ;;  %v2524_v61 = vpop.eup %2523 }
 0x19a   : > { %v1191_v1 = vadd.f32 1.0, %v2524_v61  ;;  %v2526_v5 = vpop.eup %2525 }
 0x19b   : > { %2290 = vmatmul.mubr.f32.vlgmr.msra.gmra.mxu0 %v1206_v47  ;;  %2402 = vset.pattern.permute.xlu0 %v2741_v49  ;;  %v1247_v63 = vsel %vm1130_vm3, 0.0, %v1245_v48 }
 0x19c   : > { %2294 = vmatprep.mubr.msk.f32.mxu0 %vm2739_vm0, %v2738_v37  ;;  %1689 = vperm.xlu0 %2402, %v1232_v44   ;;  %v1248_v14 = vadd.f32 %v1247_v63, %v1243_v46  ;;  %2527 = vrcp.f32 %v1191_v1 }
 0x19e   : > { %v1250_v36 = vrot.slane %v1248_v14, 6 }
 0x1a0   : > { %v1252_v50 = vsel %vm1073_vm2, 0.0, %v1250_v36 }
 0x1a1   : > { %v1253_v51 = vadd.f32 %v1252_v50, %v1248_v14 }
 0x1a3   : > { %v1255_v52 = vrot.slane %v1253_v51, 4 }
 0x1a5   : > { %v1258_v53 = vsel %vm1257_vm6, 0.0, %v1255_v52 }
 0x1a6   : > { %v1259_v54 = vadd.f32 %v1258_v53, %v1253_v51 }
 0x1a8   : > { %1669 = vperm.xlu0 %2402, %v1259_v54   ;;  %1339 = vperm.xlu1 %2403, %v1259_v54  }
 0x1a9   : > { %v2528_v13 = vpop.eup %2527 }
 0x1aa   : > { %v3097_v15 = vmul.f32 %v2528_v13, %v3030_v2 }
 0x1ac   : > { %2407 = vset.pattern.permute.xlu0 %v2742_v55  ;;  %2404 = vset.pattern.permute.xlu1 %v2740_v7 }
 0x1ad   : > { %1586 = vperm.xlu0 %2407, %v1232_v44   ;;  %1455 = vperm.xlu1 %2404, %v1259_v54  }
 0x1b1   : > { %2408 = vset.pattern.permute.xlu0 %v2740_v7  ;;  %2405 = vset.pattern.permute.xlu1 %v2742_v55  ;;  %v1192_v7 = vadd.f32 1.0, %v2526_v5 }
 0x1b2   : > { %1480 = vperm.xlu0 %2408, %v3088_v56   ;;  %1566 = vperm.xlu1 %2405, %v1259_v54  }
 0x1b3   : > { %2529 = vrcp.f32 %v1192_v7 }
 0x1b6   : > { %2406 = vset.pattern.permute.xlu1 %v2737_v0  ;;  %2411 = vset.pattern.permute.xlu0 %v2742_v55 }
 0x1b7   : > { %1366 = vperm.xlu1 %2406, %v1232_v44  }
 0x1bb   : > { %2409 = vset.pattern.permute.xlu1 %v2741_v49 }
 0x1c0   : > { %v2530_v17 = vpop.eup %2529 }
 0x1c1   : > { %v3102_v18 = vmul.f32 %v2530_v17, %v3032_v10  ;;  %v2494_v17 = vld [vmem:[#allocation8 + $0x38] sm:$0xff]  }
 0x212   : > { %v1476_v16 = vpop.permute.xlu0 %1475 }
 0x213   : > { %v1478_v4 = vmul.f32 %v1476_v16, %v3097_v15  ;;  %v2493_v16 = vld [vmem:[#allocation8 + $0x78] sm:$0xff]  }
 0x214   : > { %2245 = vmatprep.subr.bf16.mxu1 %v2493_v16 }
 0x215   : > { %1485 = vrot.lane.b32.xlu1 %v1478_v4, %s2743_s26  ;;  %v2495_v4 = vld [vmem:[#allocation8 + $0x70] sm:$0xff]   ;;  %2246 = vmatpush3.bf16.msra.mxu1 %v2494_v17 }
 0x216   : > { %2247 = vmatprep.subr.bf16.mxu1 %v2495_v4 }
 0x217   : > { %v1690_v19 = vpop.permute.xlu0 %1689 }
 0x218   : > { %v1692_v6 = vmul.f32 %v1690_v19, %v3102_v18 }
 0x21a   : > { %1699 = vrot.lane.b32.xlu1 %v1692_v6, %s2743_s26 }
 0x21e   : > { %1694 = vperm.xlu1 %2409, %v3088_v56  }
 0x222   : > { %2410 = vset.pattern.permute.xlu1 %v2737_v0  ;;  %v1344_v0 = vsub.s32 %v1263_v27, %v2972_v60 }
 0x223   : > { %v1670_v2 = vpop.permute.xlu0 %1669  ;;  %v1340_v20 = vpop.permute.xlu1 %1339 }
 0x224   : > { %v1345_v28 = vrot.slane %v1340_v20, %v1344_v0  ;;  %v1675_v60 = vrot.slane %v1670_v2, %v1344_v0 }
 0x226   : > { %v1359_v29 = vsub.f32 %v1340_v20, %v1345_v28  ;;  %v1683_v42 = vsub.f32 %v1670_v2, %v1675_v60 }
 0x228   : > { %v1587_v21 = vpop.permute.xlu0 %1586  ;;  %v1456_v22 = vpop.permute.xlu1 %1455  ;;  %v1360_v32 = vadd.f32 %v1359_v29, %v1265_v31  ;;  %v1684_v45 = vadd.f32 %v1683_v42, %v1265_v31  ;;  %v2498_v42 = vld [vmem:[#allocation8 + $0x28] sm:$0xff]  }
 0x229   : > { %v1461_v59 = vrot.slane %v1456_v22, %v1344_v0  ;;  %v1589_v36 = vmul.f32 %v1587_v21, %v3102_v18  ;;  %v2203_v21 = vmul.f32 -1.442695, %v3016_v25 }
 0x22a   : > { %v1361_v33 = vmul.f32 1.442695, %v1360_v32  ;;  %v1685_v47 = vmul.f32 1.442695, %v1684_v45  ;;  %v2503_v45 = vld [vmem:[#allocation8 + $0x50] sm:$0xff]  }
 0x22b   : > { %v1469_v40 = vsub.f32 %v1456_v22, %v1461_v59  ;;  %v2204_v22 = vmul.f32 -1.442695, %v3022_v34 }
 0x22c   : > { %2531 = vpow2.f32 %v1361_v33 }
 0x22d   : > { %v1481_v23 = vpop.permute.xlu0 %1480  ;;  %v1567_v24 = vpop.permute.xlu1 %1566  ;;  %v1470_v12 = vadd.f32 %v1469_v40, %v1265_v31 }
 0x22e   : > { %v1483_v26 = vmul.f32 %v1481_v23, %v3097_v15  ;;  %v1572_v41 = vrot.slane %v1567_v24, %v1344_v0 }
 0x22f   : > { %v1471_v43 = vmul.f32 1.442695, %v1470_v12 }
 0x230   : > { %1489 = vrot.lane.b32.xlu1 %v1483_v26, %s2743_s26  ;;  %v1580_v3 = vsub.f32 %v1567_v24, %v1572_v41 }
 0x231   : > { %2533 = vpow2.f32 %v1471_v43  ;;  %v2500_v43 = vld [vmem:[#allocation8 + $0x20] sm:$0xff]  }
 0x232   : > { %v1367_v10 = vpop.permute.xlu1 %1366  ;;  %v1581_v44 = vadd.f32 %v1580_v3, %v1265_v31  ;;  %v2497_v3 = vld [vmem:[#allocation8 + $0x68] sm:$0xff]  }
 0x233   : > { %v1369_v62 = vmul.f32 %v1367_v10, %v3097_v15 }
 0x234   : > { %1376 = vperm.xlu1 %2410, %v3088_v56   ;;  %v1582_v46 = vmul.f32 1.442695, %v1581_v44  ;;  %v2501_v44 = vld [vmem:[#allocation8 + $0x58] sm:$0xff]  }
 0x235   : > { %2293 = vmatpush3.msra.mxu0 %v1369_v62 }
 0x236   : > { %2297 = vmatprep.subr.mxu0 %v2738_v37  ;;  %2535 = vpow2.f32 %v1582_v46  ;;  %v2505_v46 = vld [vmem:[#allocation8 + $0x48] sm:$0xff]  }
 0x237   : > { %2537 = vpow2.f32 %v1685_v47  ;;  %v2506_v47 = vld [vmem:[#allocation8 + $0x8] sm:$0xff]  }
 0x238   : > { %2539 = vpow2.f32 %v2203_v21 }
 0x239   : > { %v2532_v35 = vpop.eup %2531  ;;  %2541 = vpow2.f32 %v2204_v22 }
 0x23e   : > { %v2534_v48 = vpop.eup %2533 }
 0x243   : > { %v2536_v50 = vpop.eup %2535 }
 0x244   : > { %v2538_v53 = vpop.eup %2537 }
 0x245   : > { %v2540_v23 = vpop.eup %2539 }
 0x246   : > { %v1796_v24 = vadd.f32 1.0, %v2540_v23  ;;  %v2542_v26 = vpop.eup %2541 }
 0x247   : > { %v1797_v10 = vadd.f32 1.0, %v2542_v26 }
 0x248   : > { %2543 = vrcp.f32 %v1796_v24 }
 0x249   : > { %2545 = vrcp.f32 %v1797_v10 }
 0x255   : > { %v2544_v27 = vpop.eup %2543 }
 0x256   : > { %v1802_v29 = vmul.f32 %v2544_v27, %v3016_v25  ;;  %v2499_v25 = vld [vmem:[#allocation8 + $0x60] sm:$0xff]  }
 0x25b   : > { %v1332_v11 = vpop.f32.mrf.mxu0 }
 0x25c   : > { %v1363_v38 = vmul.f32 %v2532_v35, %v1332_v11  ;;  %v1473_v63 = vmul.f32 %v2534_v48, %v1332_v11  ;;  %v1584_v51 = vmul.f32 %v2536_v50, %v1332_v11  ;;  %v1687_v54 = vmul.f32 %v2538_v53, %v1332_v11  ;;  %v2546_v35 = vpop.eup %2545  ;;  %v2507_v48 = vld [vmem:[#allocation8 + $0x40] sm:$0xff]  }
 0x25d   : > { %v2291_v39 = vpop.f32.mrf.mxu0 }
 0x25e   : > { %2295 = vmatmul.mubr.msk.f32.vlgmr.msra.gmra.mxu0 %vm1380_vm8, %v1363_v38  ;;  %v1803_v39 = vmul.f32 %v2546_v35, %v3022_v34  ;;  %v2504_v34 = vld [vmem:[#allocation8 + $0x10] sm:$0xff]  }
 0x25f   : > { %2299 = vmatprep.mubr.msk.f32.mxu0 %vm2739_vm0, %v2738_v37 }
 0x287   : > { %v1486_v14 = vpop.permute.xlu1 %1485 }
 0x288   : > { %2298 = vmatpush3.msra.mxu0 %v1486_v14 }
 0x289   : > { %2300 = vmatmul.mubr.msk.f32.vlgmr.msra.gmra.mxu0 %vm1380_vm8, %v1473_v63  ;;  %2302 = vmatprep.subr.mxu0 %v2738_v37  ;;  %v2508_v63 = vld [vmem:[#allocation8] sm:$0xff]  }
 0x28a   : > { %2303 = vmatpush3.msra.mxu0 %v1589_v36  ;;  %2304 = vmatprep.mubr.msk.f32.mxu0 %vm2739_vm0, %v2738_v37 }
 0x28b   : > { %2307 = vmatprep.subr.mxu0 %v2738_v37 }
 0x28c   : > { %v1700_v52 = vpop.permute.xlu1 %1699 }
 0x28d   : > { %2305 = vmatmul.mubr.msk.f32.vlgmr.msra.gmra.mxu0 %vm1380_vm8, %v1584_v51  ;;  %v1817_v51 = vld [vmem:[%s3193_s7] sm:$0x3] }
 0x28e   : > { %2308 = vmatpush3.msra.mxu0 %v1700_v52  ;;  %2309 = vmatprep.mubr.msk.f32.mxu0 %vm2739_vm0, %v2738_v37  ;;  %v1822_v52 = vrot.slane %v1817_v51, %v2990_v8  ;;  %v1826_v53 = vrot.slane %v1817_v51, %v2993_v9 }
 0x291   : > { %2310 = vmatmul.mubr.msk.f32.vlgmr.msra.gmra.mxu0 %vm1380_vm8, %v1687_v54 }
 0x299   : > { %v1695_v55 = vpop.permute.xlu1 %1694 }
 0x29a   : > { %v1697_v57 = vmul.f32 %v1695_v55, %v3102_v18 }
 0x29c   : > { %1703 = vrot.lane.b32.xlu0 %v1697_v57, %s2743_s26 }
 0x2a0   : > { %1591 = vperm.xlu0 %2411, %v3088_v56   ;;  %v2496_v56 = vld [vmem:[#allocation8 + $0x30] sm:$0xff]  }
 0x2a1   : > { %2248 = vmatpush3.bf16.msra.mxu1 %v2496_v56 }
 0x2a2   : > { %v1490_v1 = vpop.permute.xlu1 %1489  ;;  %2249 = vmatprep.subr.bf16.mxu1 %v2497_v3 }
 0x2a4   : > { %2412 = vset.pattern.permute.xlu0 %v2741_v49 }
 0x2a5   : > { %2250 = vmatpush3.bf16.msra.mxu1 %v2498_v42 }
 0x2a6   : > { %2251 = vmatprep.subr.bf16.mxu1 %v2499_v25 }
 0x2a9   : > { %2252 = vmatpush3.bf16.msra.mxu1 %v2500_v43 }
 0x2aa   : > { %2253 = vmatprep.subr.bf16.mxu1 %v2501_v44 }
 0x2af   : > { %v1377_v62 = vpop.permute.xlu1 %1376 }
 0x2b0   : > { %v1379_v0 = vmul.f32 %v1377_v62, %v3097_v15 }
 0x30e   : > { %v1704_v6 = vpop.permute.xlu0 %1703 }
 0x31b   : > { %v1592_v32 = vpop.permute.xlu0 %1591 }
 0x31c   : > { %v1594_v11 = vmul.f32 %v1592_v32, %v3102_v18  ;;  %v2502_v18 = vld [vmem:[#allocation8 + $0x18] sm:$0xff]  }
 0x31d   : > { %2254 = vmatpush3.bf16.msra.mxu1 %v2502_v18 }
 0x31e   : > { %v1450_v58 = vpop.f32.mrf.mxu0  ;;  %2255 = vmatprep.subr.bf16.mxu1 %v2503_v45 }
 0x31f   : > { %v1451_v28 = vadd.f32 %v1450_v58, %v1379_v0 }
 0x320   : > { %v2296_v61 = vpop.f32.mrf.mxu0 }
 0x321   : > { %2256 = vmatpush3.bf16.msra.mxu1 %v2504_v34 }
 0x322   : > { %2257 = vmatprep.subr.bf16.mxu1 %v2505_v46 }
 0x325   : > { %2258 = vmatpush3.bf16.msra.mxu1 %v2506_v47 }
 0x326   : > { %2259 = vmatprep.subr.bf16.mxu1 %v2507_v48 }
 0x329   : > { %2260 = vmatpush3.bf16.msra.mxu1 %v2508_v63 }
 0x349   : > { %v1561_v5 = vpop.f32.mrf.mxu0 }
 0x34a   : > { %v1562_v7 = vadd.f32 %v1561_v5, %v1490_v1 }
 0x34b   : > { %v2301_v13 = vpop.f32.mrf.mxu0 }
 0x34c   : > { %1780 = vrot.lane.b32.xlu1 %v1562_v7, %s2743_s26  ;;  %v2205_v13 = vld [vmem:[%s3195_s9] ss:$0 sm:$0xff] }
 0x34d   : > { %v1664_v37 = vpop.f32.mrf.mxu0 }
 0x34e   : > { %v1665_v38 = vadd.f32 %v1664_v37, %v1594_v11 }
 0x34f   : > { %v2306_v19 = vpop.f32.mrf.mxu0 }
 0x351   : > { %v1775_v2 = vpop.f32.mrf.mxu0 }
 0x352   : > { %v1776_v20 = vadd.f32 %v1775_v2, %v1704_v6 }
 0x353   : > { %v2311_v49 = vpop.f32.mrf.mxu0 }
 0x354   : > { %1784 = vrot.lane.b32.xlu1 %v1776_v20, %s2743_s26 }
 0x3be   : > { %v1781_v30 = vpop.permute.xlu1 %1780 }
 0x3bf   : > { %v1788_v31 = vsel %vm1787_vm9, %v1451_v28, %v1781_v30 }
 0x3c0   : > { %v1804_v33 = vmul.f32 %v1802_v29, %v1788_v31 }
 0x3c2   : > { %v1806_v60 = vmul.f32 %v1804_v33, %v1804_v33 }
 0x3c6   : > { %v1785_v59 = vpop.permute.xlu1 %1784 }
 0x3c7   : > { %v1789_v40 = vsel %vm1787_vm9, %v1665_v38, %v1785_v59 }
 0x3c8   : > { %v1805_v41 = vmul.f32 %v1803_v39, %v1789_v40 }
 0x3ca   : > { %v1807_v12 = vmul.f32 %v1805_v41, %v1805_v41 }
 0x3cc   : > { %v1808_v15 = vadd.f32 %v1807_v12, %v1806_v60 }
 0x3ce   : > { %1809 = vadd.xlane.f32.xlu0 %v1808_v15 }
 0x457   : > { %v1810_v14 = vpop.xlane.xlu0 %1809 }
 0x458   : > { %v1812_v36 = vmul.f32 0.00390625, %v1810_v14 }
 0x45a   : > { %v1813_v50 = vadd.f32 1e-05, %v1812_v36 }
 0x45c   : > { %2547 = vrsqrt.f32 %v1813_v50 }
 0x469   : > { %v2548_v54 = vpop.eup %2547 }
 0x46a   : > { %v1816_v55 = vmul.f32 %v2548_v54, %v1805_v41  ;;  %v1815_v57 = vmul.f32 %v2548_v54, %v1804_v33 }
 0x46c   : > { %v1830_v58 = vmul.f32 %v1826_v53, %v1816_v55  ;;  %v1829_v61 = vmul.f32 %v1822_v52, %v1815_v57 }
 0x46e   : > { %v1832_v1 = vpack.c.bf16 %v1830_v58, %v1830_v58  ;;  %v1831_v5 = vpack.c.bf16 %v1829_v61, %v1829_v61 }
 0x470   : > { %2000 = vmatprep.mubr.bf16.mxu1 %v1832_v1 }
 0x471   : > { %2001 = vmatmul.mubr.bf16.vlgmr.msra.gmra.mxu1 %v1831_v5 }
 0x531   : > { %v2261_v7 = vpop.f32.mrf.mxu1 }
 0x533   : > { %v2262_v8 = vpop.f32.mrf.mxu1 }
 0x534   : > { %v2263_v37 = vadd.f32 %v2262_v8, %v2261_v7 }
 0x535   : > { %v2264_v9 = vpop.f32.mrf.mxu1 }
 0x536   : > { %v2003_v16 = vadd.f32 %v2263_v37, %v2205_v13 }
 0x537   : > { %v2265_v17 = vpop.f32.mrf.mxu1 }
 0x538   : > { %v2008_v4 = vpack.c.bf16 %v2003_v16, %v2003_v16 }
 0x53a   : > { %2009 = vst [vmem:[%s416_s1] sm:$0xf] %v2008_v4 }
 0x53b   : > { %2668 = shalt.err (!%p2665_p9)
}
 0x53c   : > { %s2669_s26 = scalar_lea.hbm %s2022_s18, 64  ;;  %s2673_s11 = scalar_lea.hbm %s3196_s10, 128 }
 0x53d   : > { %p2670_p13 = scmp.ne.s32.totalorder %s2022_s18, %s2669_s26  ;;  %p2674_p11 = scmp.lt.s32.totalorder %s2022_s18, %s3196_s10 }
 0x53e   : > { %p2675_p1 = scmp.lt.s32.totalorder %s2673_s11, %s2669_s26 }
 0x53f   : > { %p2671_p8 = pnand %p2670_p13, %p3223_p6 }
 0x540   : > { %p2676_p2 = por %p2675_p1, %p2674_p11 }
 0x541   : > { %p2672_p10 = pneg %p2671_p8 }
 0x543   : > { %p2677_p4 = pnand %p2676_p2, %p2672_p10 }
 0x545   : > { %2680 = shalt.err (!%p2677_p4)
}
 0x546   : > { %2326 = dma.vmem_to_hbm [thread:$0]  (%p3223_p6), %s2025_s19, 64, %s2022_s18, %s2011_s22  }
 0x547 PF: > { %s2036_s15 = sand.u32 1, %s2715_s13   ;;  %p3224_p12 = scmp.ne.s32.totalorder %s3207_s20, 0 }
 0x548   : > { %p3225_p0 = scmp.ge.s32.totalorder %s2727_s16, 2  ;;  %s2037_s1 = scalar_lea.sflag [#allocation4], %s2036_s15 }
 0x54a   : > { %p2343_p5 = pnand %p3225_p0, %p3224_p12 }
 0x54c   : > { %p2344_p3 = pneg %p2343_p5 }
 0x54e   : > { %2710 = dma.done.wait (%p2344_p3), %s2037_s1, 64  }
 0x54f   : > { %2712 = vsyncadd (%p2344_p3), %s2037_s1, 4294967232  ;;  %s3226_s21 = sld [smem:[#allocation15_spill]]  ;;  %p25_p7 = scmp.ge.s32.totalorder %s2881_s12, 4  }
 0x550   : > { %s3227_s15 = sld [smem:[#allocation16_spill]]  ;;  %s3228_s13 = smov %s2719_s14 }
 0x551   : > { %s3230_s16 = smov %s2881_s12  ;;  %27 = sbr.rel (!%p25_p7) target bundleno = 11 (0xb), region = 117 }
 0x555   : > { %s3229_s14 = smov %s3226_s21 }
 0x556   :  { %2042 = vsyncpa [#allocation3], 1 }
 0x557   :  { %2044 = vsyncpa [#allocation3 + $0x1], 1 }
 0x558   :  { %2045 = vsyncpa [#allocation6], 1 }
 0x559   :  { %2046 = vsyncpa [#allocation9], 1 }
 0x55a   :  { %2047 = vsyncpa [#allocation4], 1 }
 0x55b   :  { %2049 = vsyncpa [#allocation4 + $0x1], 1 }

</bundles_post_ra>
